<compile_context>
chip_gen: v6e
topology: v6e:2x2x1
jax: 0.10.0
libtpu: 0.0.40
codegen_flags: <defaults>
</compile_context>

<pallas_src>
import jax
import jax.numpy as jnp
from jax import lax
from jax.experimental import pallas as pl
from jax.experimental.pallas import tpu as pltpu


# ------------------------------ fused kernel --------------------------------

def make_fused_kernel(num_layers, embedding_dim, hidden_dim, vocab_size,
                      seq_len, gen_steps, batch):
    E, H, V, B, T, L = (embedding_dim, hidden_dim, vocab_size, batch,
                        seq_len, num_layers)
    in_dims = [E] + [H] * (L - 1)
    f32 = jnp.float32
    bf16 = jnp.bfloat16

    def kernel(x_emb_ref, *args):
        w_refs = args[0:L]                 # (in_l + H, 4H) bf16, gate order ifgo
        ew0_ref = args[L]                  # (V, 4H) bf16  (= emb @ W0[:E, :])
        b_refs = args[L + 1:2 * L + 1]     # (1, 4H) f32
        fcw_ref = args[2 * L + 1]          # (H, V) bf16
        fcb_ref = args[2 * L + 2]          # (1, V) f32
        out_ref = args[2 * L + 3]          # (gen_steps + 1, B, V) f32

        # ---- hoisted loop-invariant constants -------------------------------
        lane4h = lax.broadcasted_iota(jnp.int32, (B, 4 * H), 1)
        is_g = jnp.logical_and(lane4h >= 2 * H, lane4h < 3 * H)
        # sigmoid(x) = 0.5*tanh(0.5x)+0.5 ; tanh branch = 1*tanh(1*x)+0
        a4h = jnp.where(is_g, jnp.float32(1.0), jnp.float32(0.5))   # (B, 4H)
        b4h = jnp.where(is_g, jnp.float32(0.0), jnp.float32(0.5))   # (B, 4H)
        col_v = lax.broadcasted_iota(jnp.int32, (B, V), 1).astype(f32)

        def gates_to_hc(gates, c):
            # single EUP tanh pass over the whole (B, 4H) tile
            t = jnp.tanh(gates * a4h)
            act = t * a4h + b4h
            i_g = act[:, 0 * H:1 * H]
            f_g = act[:, 1 * H:2 * H]
            g_g = act[:, 2 * H:3 * H]
            o_g = act[:, 3 * H:4 * H]
            c_new = f_g * c + i_g * g_g
            h_new = o_g * jnp.tanh(c_new)
            return h_new, c_new

        def cell(x, l, h_l, c_l):
            # two independent MXU pushes: x @ Wx and h @ Wh (recurrent push
            # does not wait on the previous layer's output)
            d = in_dims[l]
            gates = (jnp.dot(x.astype(bf16), w_refs[l][:d, :],
                             preferred_element_type=f32)
                     + jnp.dot(h_l.astype(bf16), w_refs[l][d:, :],
                               preferred_element_type=f32)
                     + b_refs[l][...])
            return gates_to_hc(gates, c_l)

        def fc(h_top):
            return (jnp.dot(h_top.astype(bf16), fcw_ref[...],
                            preferred_element_type=f32) + fcb_ref[...])

        def argmax_onehot(scores, col, k):
            # bf16 one-hot of the FIRST argmax along the last axis (scores f32)
            m = jnp.max(scores, axis=-1, keepdims=True)
            cand = jnp.where(scores == m, col, jnp.float32(k))
            idx = jnp.min(cand, axis=-1, keepdims=True)
            return (col_v == idx).astype(bf16)                      # (B, V)

        # ---- encode the input sequence (fully unrolled, state in vregs) ----
        h = [jnp.zeros((B, H), f32) for _ in range(L)]
        c = [jnp.zeros((B, H), f32) for _ in range(L)]
        for t in range(T):
            cur = x_emb_ref[t]                         # (B, E) bf16, static t
            for l in range(L):
                h[l], c[l] = cell(cur, l, h[l], c[l])
                cur = h[l]

        last_output = h[L - 1]                         # (B, H) f32
        out_ref[0] = fc(last_output)

        # (quirky but faithful to the reference) the first generated token is
        # argmax over the HIDDEN dim used as a vocab id; in-bounds since H<=V.
        col_h = lax.broadcasted_iota(jnp.int32, (B, H), 1).astype(f32)
        onehot0 = argmax_onehot(last_output, col_h, H)

        # ---- 179-step autoregressive generation (vreg-carried state) -------
        def gen_body(s, carry):
            hs, cs, onehot = carry
            hs, cs = list(hs), list(cs)
            # layer 0: onehot @ (emb @ W0x) and h0 @ W0h are independent
            # MXU pushes; the embedding-lookup matmul is folded into EW0.
            g0 = (jnp.dot(onehot, ew0_ref[...], preferred_element_type=f32)
                  + jnp.dot(hs[0].astype(bf16), w_refs[0][E:, :],
                            preferred_element_type=f32)
                  + b_refs[0][...])
            hs[0], cs[0] = gates_to_hc(g0, cs[0])
            cur = hs[0]
            for l in range(1, L):
                hs[l], cs[l] = cell(cur, l, hs[l], cs[l])
                cur = hs[l]
            logits = fc(cur)                           # (B, V) f32
            out_ref[s + 1] = logits
            onehot_new = argmax_onehot(logits, col_v, V)
            return tuple(hs), tuple(cs), onehot_new

        _ = lax.fori_loop(0, gen_steps, gen_body,
                          (tuple(h), tuple(c), onehot0))

    return kernel


# ------------------------------ model wrapper --------------------------------

def init_params(key, vocab_size, embedding_dim, hidden_dim, num_layers):
    keys = jax.random.split(key, 2 + 4 * num_layers + 2)
    ki = iter(keys)
    params = {}
    # nn.Embedding: N(0, 1)
    params["emb"] = jax.random.normal(next(ki), (vocab_size, embedding_dim),
                                      jnp.float32)
    stdv = float(1.0 / (hidden_dim ** 0.5))
    w_list, b_list = [], []
    for l in range(num_layers):
        in_dim = embedding_dim if l == 0 else hidden_dim
        w_ih = jax.random.uniform(next(ki), (4 * hidden_dim, in_dim),
                                  jnp.float32, -stdv, stdv)
        w_hh = jax.random.uniform(next(ki), (4 * hidden_dim, hidden_dim),
                                  jnp.float32, -stdv, stdv)
        b_ih = jax.random.uniform(next(ki), (4 * hidden_dim,),
                                  jnp.float32, -stdv, stdv)
        b_hh = jax.random.uniform(next(ki), (4 * hidden_dim,),
                                  jnp.float32, -stdv, stdv)
        # merged [x; h] weight (in+H, 4H); PyTorch gate order i,f,g,o kept
        w_list.append(jnp.concatenate([w_ih.T, w_hh.T], axis=0))
        b_list.append((b_ih + b_hh).reshape(1, 4 * hidden_dim))
    params["w"] = tuple(w_list)
    params["b"] = tuple(b_list)
    # nn.Linear(hidden_dim, vocab_size)
    fc_w = jax.random.uniform(next(ki), (vocab_size, hidden_dim),
                              jnp.float32, -stdv, stdv)
    fc_b = jax.random.uniform(next(ki), (vocab_size,),
                              jnp.float32, -stdv, stdv)
    params["fc_w"] = fc_w.T                               # (H, V)
    params["fc_b"] = fc_b.reshape(1, vocab_size)
    return params


def build_forward(num_layers, embedding_dim, hidden_dim, vocab_size,
                  seq_len, gen_steps, batch):
    E, H, V, B, T = embedding_dim, hidden_dim, vocab_size, batch, seq_len
    assert hidden_dim <= vocab_size, (
        "reference model indexes the embedding with argmax over the hidden "
        "dim; requires H <= V to stay in bounds")

    kernel = make_fused_kernel(num_layers, E, H, V, T, gen_steps, B)

    def _full(shape):
        n = len(shape)
        return pl.BlockSpec(shape, lambda i, _n=n: (0,) * _n)

    def forward(params, tokens):
        emb = params["emb"]                               # (V, E) f32
        x_emb = jnp.take(emb, tokens, axis=0)             # (B, T, E)  (glue)
        x_emb = jnp.transpose(x_emb, (1, 0, 2)).astype(jnp.bfloat16)  # (T,B,E)

        # bf16 MXU operands (state / elementwise math stays f32 in-kernel)
        w_bf = [w.astype(jnp.bfloat16) for w in params["w"]]
        ew0 = jnp.dot(emb, params["w"][0][:E, :]).astype(jnp.bfloat16)  # (V,4H)
        fcw_bf = params["fc_w"].astype(jnp.bfloat16)

        inputs = ([x_emb] + w_bf + [ew0] + list(params["b"])
                  + [fcw_bf, params["fc_b"]])
        in_specs = [_full((T, B, E))]
        in_specs += [_full(tuple(w.shape)) for w in w_bf]
        in_specs += [_full((V, 4 * H))]
        in_specs += [_full(tuple(b.shape)) for b in params["b"]]
        in_specs += [_full((H, V)), _full((1, V))]

        out = pl.pallas_call(
            kernel,
            grid=(1,),
            in_specs=in_specs,
            out_specs=_full((gen_steps + 1, B, V)),
            out_shape=jax.ShapeDtypeStruct((gen_steps + 1, B, V), jnp.float32),
            compiler_params=pltpu.CompilerParams(
                dimension_semantics=("arbitrary",)),
        )(*inputs)
        return jnp.transpose(out, (1, 0, 2))              # (B, 180, V)

    return forward


# --------------------------------- main --------------------------------------

if __name__ == "__main__":
    vocab_size = 64
    embedding_dim = 32
    hidden_dim = 32
    num_layers = 2
    batch = 2
    seq_len = 8
    gen_steps = 179

    root = jax.random.PRNGKey(0)
    k_params, k_tokens = jax.random.split(root)
    params = init_params(k_params, vocab_size, embedding_dim, hidden_dim,
                         num_layers)
    tokens = jax.random.randint(k_tokens, (batch, seq_len), 0, vocab_size,
                                dtype=jnp.int32)

    forward = jax.jit(build_forward(num_layers, embedding_dim, hidden_dim,
                                    vocab_size, seq_len, gen_steps, batch))
    preds = forward(params, tokens)
    preds = jax.block_until_ready(preds)

    assert preds.shape == (batch, 1 + gen_steps, vocab_size), preds.shape
    assert preds.dtype == jnp.float32
    assert bool(jnp.all(jnp.isfinite(preds)))
    print("KERNEL_OK")
</pallas_src>

<mosaic_0001>
module attributes {stable_mosaic.version = 11 : i64} {
  func.func @kernel(%arg0: i32, %arg1: memref<8x2x32xbf16, #tpu.memory_space<vmem>>, %arg2: memref<64x128xbf16, #tpu.memory_space<vmem>>, %arg3: memref<64x128xbf16, #tpu.memory_space<vmem>>, %arg4: memref<64x128xbf16, #tpu.memory_space<vmem>>, %arg5: memref<1x128xf32, #tpu.memory_space<vmem>>, %arg6: memref<1x128xf32, #tpu.memory_space<vmem>>, %arg7: memref<32x64xbf16, #tpu.memory_space<vmem>>, %arg8: memref<1x64xf32, #tpu.memory_space<vmem>>, %arg9: memref<180x2x64xf32, #tpu.memory_space<vmem>>) attributes {dimension_semantics = [#tpu.dimension_semantics<arbitrary>], iteration_bounds = array<i64: 1>, scalar_prefetch = 0 : i64, scratch_operands = 0 : i64, tpu.core_type = #tpu.core_type<tc>, window_params = [{pipeline_mode = #tpu.pipeline_mode<synchronous>, transform_indices = @transform_0, window_bounds = array<i64: 8, 2, 32>}, {pipeline_mode = #tpu.pipeline_mode<synchronous>, transform_indices = @transform_1, window_bounds = array<i64: 64, 128>}, {pipeline_mode = #tpu.pipeline_mode<synchronous>, transform_indices = @transform_2, window_bounds = array<i64: 64, 128>}, {pipeline_mode = #tpu.pipeline_mode<synchronous>, transform_indices = @transform_3, window_bounds = array<i64: 64, 128>}, {pipeline_mode = #tpu.pipeline_mode<synchronous>, transform_indices = @transform_4, window_bounds = array<i64: 1, 128>}, {pipeline_mode = #tpu.pipeline_mode<synchronous>, transform_indices = @transform_5, window_bounds = array<i64: 1, 128>}, {pipeline_mode = #tpu.pipeline_mode<synchronous>, transform_indices = @transform_6, window_bounds = array<i64: 32, 64>}, {pipeline_mode = #tpu.pipeline_mode<synchronous>, transform_indices = @transform_7, window_bounds = array<i64: 1, 64>}, {pipeline_mode = #tpu.pipeline_mode<synchronous>, transform_indices = @transform_8, window_bounds = array<i64: 180, 2, 64>}]} {
    %0 = tpu.iota {dimensions = array<i32: 1>} : vector<2x128xi32>
    %c64_i32 = arith.constant 64 : i32
    %1 = vector.broadcast %c64_i32 : i32 to vector<2x128xi32>
    %2 = arith.cmpi sge, %0, %1 : vector<2x128xi32>
    %c96_i32 = arith.constant 96 : i32
    %3 = vector.broadcast %c96_i32 : i32 to vector<2x128xi32>
    %4 = arith.cmpi slt, %0, %3 : vector<2x128xi32>
    %5 = arith.andi %2, %4 : vector<2x128xi1>
    %cst = arith.constant 1.000000e+00 : f32
    %cst_0 = arith.constant 5.000000e-01 : f32
    %6 = vector.broadcast %cst : f32 to vector<2x128xf32>
    %7 = vector.broadcast %cst_0 : f32 to vector<2x128xf32>
    %8 = arith.select %5, %6, %7 : vector<2x128xi1>, vector<2x128xf32>
    %cst_1 = arith.constant 0.000000e+00 : f32
    %cst_2 = arith.constant 5.000000e-01 : f32
    %9 = vector.broadcast %cst_1 : f32 to vector<2x128xf32>
    %10 = vector.broadcast %cst_2 : f32 to vector<2x128xf32>
    %11 = arith.select %5, %9, %10 : vector<2x128xi1>, vector<2x128xf32>
    %12 = tpu.iota {dimensions = array<i32: 1>} : vector<2x64xi32>
    %13 = arith.sitofp %12 : vector<2x64xi32> to vector<2x64xf32>
    %cst_3 = arith.constant 0.000000e+00 : f32
    %14 = vector.broadcast %cst_3 : f32 to vector<2x32xf32>
    %cst_4 = arith.constant 0.000000e+00 : f32
    %15 = vector.broadcast %cst_4 : f32 to vector<2x32xf32>
    %cst_5 = arith.constant 0.000000e+00 : f32
    %16 = vector.broadcast %cst_5 : f32 to vector<2x32xf32>
    %cst_6 = arith.constant 0.000000e+00 : f32
    %17 = vector.broadcast %cst_6 : f32 to vector<2x32xf32>
    %c0 = arith.constant 0 : index
    %c0_7 = arith.constant 0 : index
    %c0_8 = arith.constant 0 : index
    %18 = vector.load %arg1[%c0, %c0_7, %c0_8] : memref<8x2x32xbf16, #tpu.memory_space<vmem>>, vector<1x2x32xbf16>
    %19 = vector.shape_cast %18 : vector<1x2x32xbf16> to vector<2x32xbf16>
    %c0_9 = arith.constant 0 : index
    %c0_10 = arith.constant 0 : index
    %20 = vector.load %arg2[%c0_9, %c0_10] : memref<64x128xbf16, #tpu.memory_space<vmem>>, vector<32x128xbf16>
    %cst_11 = arith.constant dense<0.000000e+00> : vector<2x128xf32>
    %21 = tpu.matmul %19, %20, %cst_11 {dimension_numbers = #tpu.dot_dimension_numbers<[1], [0], [0], [1], [0, 0, 1, 1], [], []>} : vector<2x32xbf16>, vector<32x128xbf16>, vector<2x128xf32> -> vector<2x128xf32>
    %22 = arith.truncf %14 : vector<2x32xf32> to vector<2x32xbf16>
    %c32 = arith.constant 32 : index
    %c0_12 = arith.constant 0 : index
    %23 = vector.load %arg2[%c32, %c0_12] : memref<64x128xbf16, #tpu.memory_space<vmem>>, vector<32x128xbf16>
    %cst_13 = arith.constant dense<0.000000e+00> : vector<2x128xf32>
    %24 = tpu.matmul %22, %23, %cst_13 {dimension_numbers = #tpu.dot_dimension_numbers<[1], [0], [0], [1], [0, 0, 1, 1], [], []>} : vector<2x32xbf16>, vector<32x128xbf16>, vector<2x128xf32> -> vector<2x128xf32>
    %25 = arith.addf %21, %24 : vector<2x128xf32>
    %c0_14 = arith.constant 0 : index
    %c0_15 = arith.constant 0 : index
    %26 = vector.load %arg5[%c0_14, %c0_15] : memref<1x128xf32, #tpu.memory_space<vmem>>, vector<1x128xf32>
    %27 = vector.broadcast %26 : vector<1x128xf32> to vector<2x128xf32>
    %28 = arith.addf %25, %27 : vector<2x128xf32>
    %29 = arith.mulf %28, %8 : vector<2x128xf32>
    %30 = math.tanh %29 : vector<2x128xf32>
    %31 = arith.mulf %30, %8 : vector<2x128xf32>
    %32 = arith.addf %31, %11 : vector<2x128xf32>
    %33 = vector.extract_strided_slice %32 {offsets = [0, 0], sizes = [2, 32], strides = [1, 1]} : vector<2x128xf32> to vector<2x32xf32>
    %34 = vector.extract_strided_slice %32 {offsets = [0, 32], sizes = [2, 32], strides = [1, 1]} : vector<2x128xf32> to vector<2x32xf32>
    %35 = vector.extract_strided_slice %32 {offsets = [0, 64], sizes = [2, 32], strides = [1, 1]} : vector<2x128xf32> to vector<2x32xf32>
    %36 = vector.extract_strided_slice %32 {offsets = [0, 96], sizes = [2, 32], strides = [1, 1]} : vector<2x128xf32> to vector<2x32xf32>
    %37 = arith.mulf %34, %16 : vector<2x32xf32>
    %38 = arith.mulf %33, %35 : vector<2x32xf32>
    %39 = arith.addf %37, %38 : vector<2x32xf32>
    %40 = math.tanh %39 : vector<2x32xf32>
    %41 = arith.mulf %36, %40 : vector<2x32xf32>
    %42 = arith.truncf %41 : vector<2x32xf32> to vector<2x32xbf16>
    %c0_16 = arith.constant 0 : index
    %c0_17 = arith.constant 0 : index
    %43 = vector.load %arg3[%c0_16, %c0_17] : memref<64x128xbf16, #tpu.memory_space<vmem>>, vector<32x128xbf16>
    %cst_18 = arith.constant dense<0.000000e+00> : vector<2x128xf32>
    %44 = tpu.matmul %42, %43, %cst_18 {dimension_numbers = #tpu.dot_dimension_numbers<[1], [0], [0], [1], [0, 0, 1, 1], [], []>} : vector<2x32xbf16>, vector<32x128xbf16>, vector<2x128xf32> -> vector<2x128xf32>
    %45 = arith.truncf %15 : vector<2x32xf32> to vector<2x32xbf16>
    %c32_19 = arith.constant 32 : index
    %c0_20 = arith.constant 0 : index
    %46 = vector.load %arg3[%c32_19, %c0_20] : memref<64x128xbf16, #tpu.memory_space<vmem>>, vector<32x128xbf16>
    %cst_21 = arith.constant dense<0.000000e+00> : vector<2x128xf32>
    %47 = tpu.matmul %45, %46, %cst_21 {dimension_numbers = #tpu.dot_dimension_numbers<[1], [0], [0], [1], [0, 0, 1, 1], [], []>} : vector<2x32xbf16>, vector<32x128xbf16>, vector<2x128xf32> -> vector<2x128xf32>
    %48 = arith.addf %44, %47 : vector<2x128xf32>
    %c0_22 = arith.constant 0 : index
    %c0_23 = arith.constant 0 : index
    %49 = vector.load %arg6[%c0_22, %c0_23] : memref<1x128xf32, #tpu.memory_space<vmem>>, vector<1x128xf32>
    %50 = vector.broadcast %49 : vector<1x128xf32> to vector<2x128xf32>
    %51 = arith.addf %48, %50 : vector<2x128xf32>
    %52 = arith.mulf %51, %8 : vector<2x128xf32>
    %53 = math.tanh %52 : vector<2x128xf32>
    %54 = arith.mulf %53, %8 : vector<2x128xf32>
    %55 = arith.addf %54, %11 : vector<2x128xf32>
    %56 = vector.extract_strided_slice %55 {offsets = [0, 0], sizes = [2, 32], strides = [1, 1]} : vector<2x128xf32> to vector<2x32xf32>
    %57 = vector.extract_strided_slice %55 {offsets = [0, 32], sizes = [2, 32], strides = [1, 1]} : vector<2x128xf32> to vector<2x32xf32>
    %58 = vector.extract_strided_slice %55 {offsets = [0, 64], sizes = [2, 32], strides = [1, 1]} : vector<2x128xf32> to vector<2x32xf32>
    %59 = vector.extract_strided_slice %55 {offsets = [0, 96], sizes = [2, 32], strides = [1, 1]} : vector<2x128xf32> to vector<2x32xf32>
    %60 = arith.mulf %57, %17 : vector<2x32xf32>
    %61 = arith.mulf %56, %58 : vector<2x32xf32>
    %62 = arith.addf %60, %61 : vector<2x32xf32>
    %63 = math.tanh %62 : vector<2x32xf32>
    %64 = arith.mulf %59, %63 : vector<2x32xf32>
    %c1 = arith.constant 1 : index
    %c0_24 = arith.constant 0 : index
    %c0_25 = arith.constant 0 : index
    %65 = vector.load %arg1[%c1, %c0_24, %c0_25] : memref<8x2x32xbf16, #tpu.memory_space<vmem>>, vector<1x2x32xbf16>
    %66 = vector.shape_cast %65 : vector<1x2x32xbf16> to vector<2x32xbf16>
    %c0_26 = arith.constant 0 : index
    %c0_27 = arith.constant 0 : index
    %67 = vector.load %arg2[%c0_26, %c0_27] : memref<64x128xbf16, #tpu.memory_space<vmem>>, vector<32x128xbf16>
    %cst_28 = arith.constant dense<0.000000e+00> : vector<2x128xf32>
    %68 = tpu.matmul %66, %67, %cst_28 {dimension_numbers = #tpu.dot_dimension_numbers<[1], [0], [0], [1], [0, 0, 1, 1], [], []>} : vector<2x32xbf16>, vector<32x128xbf16>, vector<2x128xf32> -> vector<2x128xf32>
    %69 = arith.truncf %41 : vector<2x32xf32> to vector<2x32xbf16>
    %c32_29 = arith.constant 32 : index
    %c0_30 = arith.constant 0 : index
    %70 = vector.load %arg2[%c32_29, %c0_30] : memref<64x128xbf16, #tpu.memory_space<vmem>>, vector<32x128xbf16>
    %cst_31 = arith.constant dense<0.000000e+00> : vector<2x128xf32>
    %71 = tpu.matmul %69, %70, %cst_31 {dimension_numbers = #tpu.dot_dimension_numbers<[1], [0], [0], [1], [0, 0, 1, 1], [], []>} : vector<2x32xbf16>, vector<32x128xbf16>, vector<2x128xf32> -> vector<2x128xf32>
    %72 = arith.addf %68, %71 : vector<2x128xf32>
    %c0_32 = arith.constant 0 : index
    %c0_33 = arith.constant 0 : index
    %73 = vector.load %arg5[%c0_32, %c0_33] : memref<1x128xf32, #tpu.memory_space<vmem>>, vector<1x128xf32>
    %74 = vector.broadcast %73 : vector<1x128xf32> to vector<2x128xf32>
    %75 = arith.addf %72, %74 : vector<2x128xf32>
    %76 = arith.mulf %75, %8 : vector<2x128xf32>
    %77 = math.tanh %76 : vector<2x128xf32>
    %78 = arith.mulf %77, %8 : vector<2x128xf32>
    %79 = arith.addf %78, %11 : vector<2x128xf32>
    %80 = vector.extract_strided_slice %79 {offsets = [0, 0], sizes = [2, 32], strides = [1, 1]} : vector<2x128xf32> to vector<2x32xf32>
    %81 = vector.extract_strided_slice %79 {offsets = [0, 32], sizes = [2, 32], strides = [1, 1]} : vector<2x128xf32> to vector<2x32xf32>
    %82 = vector.extract_strided_slice %79 {offsets = [0, 64], sizes = [2, 32], strides = [1, 1]} : vector<2x128xf32> to vector<2x32xf32>
    %83 = vector.extract_strided_slice %79 {offsets = [0, 96], sizes = [2, 32], strides = [1, 1]} : vector<2x128xf32> to vector<2x32xf32>
    %84 = arith.mulf %81, %39 : vector<2x32xf32>
    %85 = arith.mulf %80, %82 : vector<2x32xf32>
    %86 = arith.addf %84, %85 : vector<2x32xf32>
    %87 = math.tanh %86 : vector<2x32xf32>
    %88 = arith.mulf %83, %87 : vector<2x32xf32>
    %89 = arith.truncf %88 : vector<2x32xf32> to vector<2x32xbf16>
    %c0_34 = arith.constant 0 : index
    %c0_35 = arith.constant 0 : index
    %90 = vector.load %arg3[%c0_34, %c0_35] : memref<64x128xbf16, #tpu.memory_space<vmem>>, vector<32x128xbf16>
    %cst_36 = arith.constant dense<0.000000e+00> : vector<2x128xf32>
    %91 = tpu.matmul %89, %90, %cst_36 {dimension_numbers = #tpu.dot_dimension_numbers<[1], [0], [0], [1], [0, 0, 1, 1], [], []>} : vector<2x32xbf16>, vector<32x128xbf16>, vector<2x128xf32> -> vector<2x128xf32>
    %92 = arith.truncf %64 : vector<2x32xf32> to vector<2x32xbf16>
    %c32_37 = arith.constant 32 : index
    %c0_38 = arith.constant 0 : index
    %93 = vector.load %arg3[%c32_37, %c0_38] : memref<64x128xbf16, #tpu.memory_space<vmem>>, vector<32x128xbf16>
    %cst_39 = arith.constant dense<0.000000e+00> : vector<2x128xf32>
    %94 = tpu.matmul %92, %93, %cst_39 {dimension_numbers = #tpu.dot_dimension_numbers<[1], [0], [0], [1], [0, 0, 1, 1], [], []>} : vector<2x32xbf16>, vector<32x128xbf16>, vector<2x128xf32> -> vector<2x128xf32>
    %95 = arith.addf %91, %94 : vector<2x128xf32>
    %c0_40 = arith.constant 0 : index
    %c0_41 = arith.constant 0 : index
    %96 = vector.load %arg6[%c0_40, %c0_41] : memref<1x128xf32, #tpu.memory_space<vmem>>, vector<1x128xf32>
    %97 = vector.broadcast %96 : vector<1x128xf32> to vector<2x128xf32>
    %98 = arith.addf %95, %97 : vector<2x128xf32>
    %99 = arith.mulf %98, %8 : vector<2x128xf32>
    %100 = math.tanh %99 : vector<2x128xf32>
    %101 = arith.mulf %100, %8 : vector<2x128xf32>
    %102 = arith.addf %101, %11 : vector<2x128xf32>
    %103 = vector.extract_strided_slice %102 {offsets = [0, 0], sizes = [2, 32], strides = [1, 1]} : vector<2x128xf32> to vector<2x32xf32>
    %104 = vector.extract_strided_slice %102 {offsets = [0, 32], sizes = [2, 32], strides = [1, 1]} : vector<2x128xf32> to vector<2x32xf32>
    %105 = vector.extract_strided_slice %102 {offsets = [0, 64], sizes = [2, 32], strides = [1, 1]} : vector<2x128xf32> to vector<2x32xf32>
    %106 = vector.extract_strided_slice %102 {offsets = [0, 96], sizes = [2, 32], strides = [1, 1]} : vector<2x128xf32> to vector<2x32xf32>
    %107 = arith.mulf %104, %62 : vector<2x32xf32>
    %108 = arith.mulf %103, %105 : vector<2x32xf32>
    %109 = arith.addf %107, %108 : vector<2x32xf32>
    %110 = math.tanh %109 : vector<2x32xf32>
    %111 = arith.mulf %106, %110 : vector<2x32xf32>
    %c2 = arith.constant 2 : index
    %c0_42 = arith.constant 0 : index
    %c0_43 = arith.constant 0 : index
    %112 = vector.load %arg1[%c2, %c0_42, %c0_43] : memref<8x2x32xbf16, #tpu.memory_space<vmem>>, vector<1x2x32xbf16>
    %113 = vector.shape_cast %112 : vector<1x2x32xbf16> to vector<2x32xbf16>
    %c0_44 = arith.constant 0 : index
    %c0_45 = arith.constant 0 : index
    %114 = vector.load %arg2[%c0_44, %c0_45] : memref<64x128xbf16, #tpu.memory_space<vmem>>, vector<32x128xbf16>
    %cst_46 = arith.constant dense<0.000000e+00> : vector<2x128xf32>
    %115 = tpu.matmul %113, %114, %cst_46 {dimension_numbers = #tpu.dot_dimension_numbers<[1], [0], [0], [1], [0, 0, 1, 1], [], []>} : vector<2x32xbf16>, vector<32x128xbf16>, vector<2x128xf32> -> vector<2x128xf32>
    %116 = arith.truncf %88 : vector<2x32xf32> to vector<2x32xbf16>
    %c32_47 = arith.constant 32 : index
    %c0_48 = arith.constant 0 : index
    %117 = vector.load %arg2[%c32_47, %c0_48] : memref<64x128xbf16, #tpu.memory_space<vmem>>, vector<32x128xbf16>
    %cst_49 = arith.constant dense<0.000000e+00> : vector<2x128xf32>
    %118 = tpu.matmul %116, %117, %cst_49 {dimension_numbers = #tpu.dot_dimension_numbers<[1], [0], [0], [1], [0, 0, 1, 1], [], []>} : vector<2x32xbf16>, vector<32x128xbf16>, vector<2x128xf32> -> vector<2x128xf32>
    %119 = arith.addf %115, %118 : vector<2x128xf32>
    %c0_50 = arith.constant 0 : index
    %c0_51 = arith.constant 0 : index
    %120 = vector.load %arg5[%c0_50, %c0_51] : memref<1x128xf32, #tpu.memory_space<vmem>>, vector<1x128xf32>
    %121 = vector.broadcast %120 : vector<1x128xf32> to vector<2x128xf32>
    %122 = arith.addf %119, %121 : vector<2x128xf32>
    %123 = arith.mulf %122, %8 : vector<2x128xf32>
    %124 = math.tanh %123 : vector<2x128xf32>
    %125 = arith.mulf %124, %8 : vector<2x128xf32>
    %126 = arith.addf %125, %11 : vector<2x128xf32>
    %127 = vector.extract_strided_slice %126 {offsets = [0, 0], sizes = [2, 32], strides = [1, 1]} : vector<2x128xf32> to vector<2x32xf32>
    %128 = vector.extract_strided_slice %126 {offsets = [0, 32], sizes = [2, 32], strides = [1, 1]} : vector<2x128xf32> to vector<2x32xf32>
    %129 = vector.extract_strided_slice %126 {offsets = [0, 64], sizes = [2, 32], strides = [1, 1]} : vector<2x128xf32> to vector<2x32xf32>
    %130 = vector.extract_strided_slice %126 {offsets = [0, 96], sizes = [2, 32], strides = [1, 1]} : vector<2x128xf32> to vector<2x32xf32>
    %131 = arith.mulf %128, %86 : vector<2x32xf32>
    %132 = arith.mulf %127, %129 : vector<2x32xf32>
    %133 = arith.addf %131, %132 : vector<2x32xf32>
    %134 = math.tanh %133 : vector<2x32xf32>
    %135 = arith.mulf %130, %134 : vector<2x32xf32>
    %136 = arith.truncf %135 : vector<2x32xf32> to vector<2x32xbf16>
    %c0_52 = arith.constant 0 : index
    %c0_53 = arith.constant 0 : index
    %137 = vector.load %arg3[%c0_52, %c0_53] : memref<64x128xbf16, #tpu.memory_space<vmem>>, vector<32x128xbf16>
    %cst_54 = arith.constant dense<0.000000e+00> : vector<2x128xf32>
    %138 = tpu.matmul %136, %137, %cst_54 {dimension_numbers = #tpu.dot_dimension_numbers<[1], [0], [0], [1], [0, 0, 1, 1], [], []>} : vector<2x32xbf16>, vector<32x128xbf16>, vector<2x128xf32> -> vector<2x128xf32>
    %139 = arith.truncf %111 : vector<2x32xf32> to vector<2x32xbf16>
    %c32_55 = arith.constant 32 : index
    %c0_56 = arith.constant 0 : index
    %140 = vector.load %arg3[%c32_55, %c0_56] : memref<64x128xbf16, #tpu.memory_space<vmem>>, vector<32x128xbf16>
    %cst_57 = arith.constant dense<0.000000e+00> : vector<2x128xf32>
    %141 = tpu.matmul %139, %140, %cst_57 {dimension_numbers = #tpu.dot_dimension_numbers<[1], [0], [0], [1], [0, 0, 1, 1], [], []>} : vector<2x32xbf16>, vector<32x128xbf16>, vector<2x128xf32> -> vector<2x128xf32>
    %142 = arith.addf %138, %141 : vector<2x128xf32>
    %c0_58 = arith.constant 0 : index
    %c0_59 = arith.constant 0 : index
    %143 = vector.load %arg6[%c0_58, %c0_59] : memref<1x128xf32, #tpu.memory_space<vmem>>, vector<1x128xf32>
    %144 = vector.broadcast %143 : vector<1x128xf32> to vector<2x128xf32>
    %145 = arith.addf %142, %144 : vector<2x128xf32>
    %146 = arith.mulf %145, %8 : vector<2x128xf32>
    %147 = math.tanh %146 : vector<2x128xf32>
    %148 = arith.mulf %147, %8 : vector<2x128xf32>
    %149 = arith.addf %148, %11 : vector<2x128xf32>
    %150 = vector.extract_strided_slice %149 {offsets = [0, 0], sizes = [2, 32], strides = [1, 1]} : vector<2x128xf32> to vector<2x32xf32>
    %151 = vector.extract_strided_slice %149 {offsets = [0, 32], sizes = [2, 32], strides = [1, 1]} : vector<2x128xf32> to vector<2x32xf32>
    %152 = vector.extract_strided_slice %149 {offsets = [0, 64], sizes = [2, 32], strides = [1, 1]} : vector<2x128xf32> to vector<2x32xf32>
    %153 = vector.extract_strided_slice %149 {offsets = [0, 96], sizes = [2, 32], strides = [1, 1]} : vector<2x128xf32> to vector<2x32xf32>
    %154 = arith.mulf %151, %109 : vector<2x32xf32>
    %155 = arith.mulf %150, %152 : vector<2x32xf32>
    %156 = arith.addf %154, %155 : vector<2x32xf32>
    %157 = math.tanh %156 : vector<2x32xf32>
    %158 = arith.mulf %153, %157 : vector<2x32xf32>
    %c3 = arith.constant 3 : index
    %c0_60 = arith.constant 0 : index
    %c0_61 = arith.constant 0 : index
    %159 = vector.load %arg1[%c3, %c0_60, %c0_61] : memref<8x2x32xbf16, #tpu.memory_space<vmem>>, vector<1x2x32xbf16>
    %160 = vector.shape_cast %159 : vector<1x2x32xbf16> to vector<2x32xbf16>
    %c0_62 = arith.constant 0 : index
    %c0_63 = arith.constant 0 : index
    %161 = vector.load %arg2[%c0_62, %c0_63] : memref<64x128xbf16, #tpu.memory_space<vmem>>, vector<32x128xbf16>
    %cst_64 = arith.constant dense<0.000000e+00> : vector<2x128xf32>
    %162 = tpu.matmul %160, %161, %cst_64 {dimension_numbers = #tpu.dot_dimension_numbers<[1], [0], [0], [1], [0, 0, 1, 1], [], []>} : vector<2x32xbf16>, vector<32x128xbf16>, vector<2x128xf32> -> vector<2x128xf32>
    %163 = arith.truncf %135 : vector<2x32xf32> to vector<2x32xbf16>
    %c32_65 = arith.constant 32 : index
    %c0_66 = arith.constant 0 : index
    %164 = vector.load %arg2[%c32_65, %c0_66] : memref<64x128xbf16, #tpu.memory_space<vmem>>, vector<32x128xbf16>
    %cst_67 = arith.constant dense<0.000000e+00> : vector<2x128xf32>
    %165 = tpu.matmul %163, %164, %cst_67 {dimension_numbers = #tpu.dot_dimension_numbers<[1], [0], [0], [1], [0, 0, 1, 1], [], []>} : vector<2x32xbf16>, vector<32x128xbf16>, vector<2x128xf32> -> vector<2x128xf32>
    %166 = arith.addf %162, %165 : vector<2x128xf32>
    %c0_68 = arith.constant 0 : index
    %c0_69 = arith.constant 0 : index
    %167 = vector.load %arg5[%c0_68, %c0_69] : memref<1x128xf32, #tpu.memory_space<vmem>>, vector<1x128xf32>
    %168 = vector.broadcast %167 : vector<1x128xf32> to vector<2x128xf32>
    %169 = arith.addf %166, %168 : vector<2x128xf32>
    %170 = arith.mulf %169, %8 : vector<2x128xf32>
    %171 = math.tanh %170 : vector<2x128xf32>
    %172 = arith.mulf %171, %8 : vector<2x128xf32>
    %173 = arith.addf %172, %11 : vector<2x128xf32>
    %174 = vector.extract_strided_slice %173 {offsets = [0, 0], sizes = [2, 32], strides = [1, 1]} : vector<2x128xf32> to vector<2x32xf32>
    %175 = vector.extract_strided_slice %173 {offsets = [0, 32], sizes = [2, 32], strides = [1, 1]} : vector<2x128xf32> to vector<2x32xf32>
    %176 = vector.extract_strided_slice %173 {offsets = [0, 64], sizes = [2, 32], strides = [1, 1]} : vector<2x128xf32> to vector<2x32xf32>
    %177 = vector.extract_strided_slice %173 {offsets = [0, 96], sizes = [2, 32], strides = [1, 1]} : vector<2x128xf32> to vector<2x32xf32>
    %178 = arith.mulf %175, %133 : vector<2x32xf32>
    %179 = arith.mulf %174, %176 : vector<2x32xf32>
    %180 = arith.addf %178, %179 : vector<2x32xf32>
    %181 = math.tanh %180 : vector<2x32xf32>
    %182 = arith.mulf %177, %181 : vector<2x32xf32>
    %183 = arith.truncf %182 : vector<2x32xf32> to vector<2x32xbf16>
    %c0_70 = arith.constant 0 : index
    %c0_71 = arith.constant 0 : index
    %184 = vector.load %arg3[%c0_70, %c0_71] : memref<64x128xbf16, #tpu.memory_space<vmem>>, vector<32x128xbf16>
    %cst_72 = arith.constant dense<0.000000e+00> : vector<2x128xf32>
    %185 = tpu.matmul %183, %184, %cst_72 {dimension_numbers = #tpu.dot_dimension_numbers<[1], [0], [0], [1], [0, 0, 1, 1], [], []>} : vector<2x32xbf16>, vector<32x128xbf16>, vector<2x128xf32> -> vector<2x128xf32>
    %186 = arith.truncf %158 : vector<2x32xf32> to vector<2x32xbf16>
    %c32_73 = arith.constant 32 : index
    %c0_74 = arith.constant 0 : index
    %187 = vector.load %arg3[%c32_73, %c0_74] : memref<64x128xbf16, #tpu.memory_space<vmem>>, vector<32x128xbf16>
    %cst_75 = arith.constant dense<0.000000e+00> : vector<2x128xf32>
    %188 = tpu.matmul %186, %187, %cst_75 {dimension_numbers = #tpu.dot_dimension_numbers<[1], [0], [0], [1], [0, 0, 1, 1], [], []>} : vector<2x32xbf16>, vector<32x128xbf16>, vector<2x128xf32> -> vector<2x128xf32>
    %189 = arith.addf %185, %188 : vector<2x128xf32>
    %c0_76 = arith.constant 0 : index
    %c0_77 = arith.constant 0 : index
    %190 = vector.load %arg6[%c0_76, %c0_77] : memref<1x128xf32, #tpu.memory_space<vmem>>, vector<1x128xf32>
    %191 = vector.broadcast %190 : vector<1x128xf32> to vector<2x128xf32>
    %192 = arith.addf %189, %191 : vector<2x128xf32>
    %193 = arith.mulf %192, %8 : vector<2x128xf32>
    %194 = math.tanh %193 : vector<2x128xf32>
    %195 = arith.mulf %194, %8 : vector<2x128xf32>
    %196 = arith.addf %195, %11 : vector<2x128xf32>
    %197 = vector.extract_strided_slice %196 {offsets = [0, 0], sizes = [2, 32], strides = [1, 1]} : vector<2x128xf32> to vector<2x32xf32>
    %198 = vector.extract_strided_slice %196 {offsets = [0, 32], sizes = [2, 32], strides = [1, 1]} : vector<2x128xf32> to vector<2x32xf32>
    %199 = vector.extract_strided_slice %196 {offsets = [0, 64], sizes = [2, 32], strides = [1, 1]} : vector<2x128xf32> to vector<2x32xf32>
    %200 = vector.extract_strided_slice %196 {offsets = [0, 96], sizes = [2, 32], strides = [1, 1]} : vector<2x128xf32> to vector<2x32xf32>
    %201 = arith.mulf %198, %156 : vector<2x32xf32>
    %202 = arith.mulf %197, %199 : vector<2x32xf32>
    %203 = arith.addf %201, %202 : vector<2x32xf32>
    %204 = math.tanh %203 : vector<2x32xf32>
    %205 = arith.mulf %200, %204 : vector<2x32xf32>
    %c4 = arith.constant 4 : index
    %c0_78 = arith.constant 0 : index
    %c0_79 = arith.constant 0 : index
    %206 = vector.load %arg1[%c4, %c0_78, %c0_79] : memref<8x2x32xbf16, #tpu.memory_space<vmem>>, vector<1x2x32xbf16>
    %207 = vector.shape_cast %206 : vector<1x2x32xbf16> to vector<2x32xbf16>
    %c0_80 = arith.constant 0 : index
    %c0_81 = arith.constant 0 : index
    %208 = vector.load %arg2[%c0_80, %c0_81] : memref<64x128xbf16, #tpu.memory_space<vmem>>, vector<32x128xbf16>
    %cst_82 = arith.constant dense<0.000000e+00> : vector<2x128xf32>
    %209 = tpu.matmul %207, %208, %cst_82 {dimension_numbers = #tpu.dot_dimension_numbers<[1], [0], [0], [1], [0, 0, 1, 1], [], []>} : vector<2x32xbf16>, vector<32x128xbf16>, vector<2x128xf32> -> vector<2x128xf32>
    %210 = arith.truncf %182 : vector<2x32xf32> to vector<2x32xbf16>
    %c32_83 = arith.constant 32 : index
    %c0_84 = arith.constant 0 : index
    %211 = vector.load %arg2[%c32_83, %c0_84] : memref<64x128xbf16, #tpu.memory_space<vmem>>, vector<32x128xbf16>
    %cst_85 = arith.constant dense<0.000000e+00> : vector<2x128xf32>
    %212 = tpu.matmul %210, %211, %cst_85 {dimension_numbers = #tpu.dot_dimension_numbers<[1], [0], [0], [1], [0, 0, 1, 1], [], []>} : vector<2x32xbf16>, vector<32x128xbf16>, vector<2x128xf32> -> vector<2x128xf32>
    %213 = arith.addf %209, %212 : vector<2x128xf32>
    %c0_86 = arith.constant 0 : index
    %c0_87 = arith.constant 0 : index
    %214 = vector.load %arg5[%c0_86, %c0_87] : memref<1x128xf32, #tpu.memory_space<vmem>>, vector<1x128xf32>
    %215 = vector.broadcast %214 : vector<1x128xf32> to vector<2x128xf32>
    %216 = arith.addf %213, %215 : vector<2x128xf32>
    %217 = arith.mulf %216, %8 : vector<2x128xf32>
    %218 = math.tanh %217 : vector<2x128xf32>
    %219 = arith.mulf %218, %8 : vector<2x128xf32>
    %220 = arith.addf %219, %11 : vector<2x128xf32>
    %221 = vector.extract_strided_slice %220 {offsets = [0, 0], sizes = [2, 32], strides = [1, 1]} : vector<2x128xf32> to vector<2x32xf32>
    %222 = vector.extract_strided_slice %220 {offsets = [0, 32], sizes = [2, 32], strides = [1, 1]} : vector<2x128xf32> to vector<2x32xf32>
    %223 = vector.extract_strided_slice %220 {offsets = [0, 64], sizes = [2, 32], strides = [1, 1]} : vector<2x128xf32> to vector<2x32xf32>
    %224 = vector.extract_strided_slice %220 {offsets = [0, 96], sizes = [2, 32], strides = [1, 1]} : vector<2x128xf32> to vector<2x32xf32>
    %225 = arith.mulf %222, %180 : vector<2x32xf32>
    %226 = arith.mulf %221, %223 : vector<2x32xf32>
    %227 = arith.addf %225, %226 : vector<2x32xf32>
    %228 = math.tanh %227 : vector<2x32xf32>
    %229 = arith.mulf %224, %228 : vector<2x32xf32>
    %230 = arith.truncf %229 : vector<2x32xf32> to vector<2x32xbf16>
    %c0_88 = arith.constant 0 : index
    %c0_89 = arith.constant 0 : index
    %231 = vector.load %arg3[%c0_88, %c0_89] : memref<64x128xbf16, #tpu.memory_space<vmem>>, vector<32x128xbf16>
    %cst_90 = arith.constant dense<0.000000e+00> : vector<2x128xf32>
    %232 = tpu.matmul %230, %231, %cst_90 {dimension_numbers = #tpu.dot_dimension_numbers<[1], [0], [0], [1], [0, 0, 1, 1], [], []>} : vector<2x32xbf16>, vector<32x128xbf16>, vector<2x128xf32> -> vector<2x128xf32>
    %233 = arith.truncf %205 : vector<2x32xf32> to vector<2x32xbf16>
    %c32_91 = arith.constant 32 : index
    %c0_92 = arith.constant 0 : index
    %234 = vector.load %arg3[%c32_91, %c0_92] : memref<64x128xbf16, #tpu.memory_space<vmem>>, vector<32x128xbf16>
    %cst_93 = arith.constant dense<0.000000e+00> : vector<2x128xf32>
    %235 = tpu.matmul %233, %234, %cst_93 {dimension_numbers = #tpu.dot_dimension_numbers<[1], [0], [0], [1], [0, 0, 1, 1], [], []>} : vector<2x32xbf16>, vector<32x128xbf16>, vector<2x128xf32> -> vector<2x128xf32>
    %236 = arith.addf %232, %235 : vector<2x128xf32>
    %c0_94 = arith.constant 0 : index
    %c0_95 = arith.constant 0 : index
    %237 = vector.load %arg6[%c0_94, %c0_95] : memref<1x128xf32, #tpu.memory_space<vmem>>, vector<1x128xf32>
    %238 = vector.broadcast %237 : vector<1x128xf32> to vector<2x128xf32>
    %239 = arith.addf %236, %238 : vector<2x128xf32>
    %240 = arith.mulf %239, %8 : vector<2x128xf32>
    %241 = math.tanh %240 : vector<2x128xf32>
    %242 = arith.mulf %241, %8 : vector<2x128xf32>
    %243 = arith.addf %242, %11 : vector<2x128xf32>
    %244 = vector.extract_strided_slice %243 {offsets = [0, 0], sizes = [2, 32], strides = [1, 1]} : vector<2x128xf32> to vector<2x32xf32>
    %245 = vector.extract_strided_slice %243 {offsets = [0, 32], sizes = [2, 32], strides = [1, 1]} : vector<2x128xf32> to vector<2x32xf32>
    %246 = vector.extract_strided_slice %243 {offsets = [0, 64], sizes = [2, 32], strides = [1, 1]} : vector<2x128xf32> to vector<2x32xf32>
    %247 = vector.extract_strided_slice %243 {offsets = [0, 96], sizes = [2, 32], strides = [1, 1]} : vector<2x128xf32> to vector<2x32xf32>
    %248 = arith.mulf %245, %203 : vector<2x32xf32>
    %249 = arith.mulf %244, %246 : vector<2x32xf32>
    %250 = arith.addf %248, %249 : vector<2x32xf32>
    %251 = math.tanh %250 : vector<2x32xf32>
    %252 = arith.mulf %247, %251 : vector<2x32xf32>
    %c5 = arith.constant 5 : index
    %c0_96 = arith.constant 0 : index
    %c0_97 = arith.constant 0 : index
    %253 = vector.load %arg1[%c5, %c0_96, %c0_97] : memref<8x2x32xbf16, #tpu.memory_space<vmem>>, vector<1x2x32xbf16>
    %254 = vector.shape_cast %253 : vector<1x2x32xbf16> to vector<2x32xbf16>
    %c0_98 = arith.constant 0 : index
    %c0_99 = arith.constant 0 : index
    %255 = vector.load %arg2[%c0_98, %c0_99] : memref<64x128xbf16, #tpu.memory_space<vmem>>, vector<32x128xbf16>
    %cst_100 = arith.constant dense<0.000000e+00> : vector<2x128xf32>
    %256 = tpu.matmul %254, %255, %cst_100 {dimension_numbers = #tpu.dot_dimension_numbers<[1], [0], [0], [1], [0, 0, 1, 1], [], []>} : vector<2x32xbf16>, vector<32x128xbf16>, vector<2x128xf32> -> vector<2x128xf32>
    %257 = arith.truncf %229 : vector<2x32xf32> to vector<2x32xbf16>
    %c32_101 = arith.constant 32 : index
    %c0_102 = arith.constant 0 : index
    %258 = vector.load %arg2[%c32_101, %c0_102] : memref<64x128xbf16, #tpu.memory_space<vmem>>, vector<32x128xbf16>
    %cst_103 = arith.constant dense<0.000000e+00> : vector<2x128xf32>
    %259 = tpu.matmul %257, %258, %cst_103 {dimension_numbers = #tpu.dot_dimension_numbers<[1], [0], [0], [1], [0, 0, 1, 1], [], []>} : vector<2x32xbf16>, vector<32x128xbf16>, vector<2x128xf32> -> vector<2x128xf32>
    %260 = arith.addf %256, %259 : vector<2x128xf32>
    %c0_104 = arith.constant 0 : index
    %c0_105 = arith.constant 0 : index
    %261 = vector.load %arg5[%c0_104, %c0_105] : memref<1x128xf32, #tpu.memory_space<vmem>>, vector<1x128xf32>
    %262 = vector.broadcast %261 : vector<1x128xf32> to vector<2x128xf32>
    %263 = arith.addf %260, %262 : vector<2x128xf32>
    %264 = arith.mulf %263, %8 : vector<2x128xf32>
    %265 = math.tanh %264 : vector<2x128xf32>
    %266 = arith.mulf %265, %8 : vector<2x128xf32>
    %267 = arith.addf %266, %11 : vector<2x128xf32>
    %268 = vector.extract_strided_slice %267 {offsets = [0, 0], sizes = [2, 32], strides = [1, 1]} : vector<2x128xf32> to vector<2x32xf32>
    %269 = vector.extract_strided_slice %267 {offsets = [0, 32], sizes = [2, 32], strides = [1, 1]} : vector<2x128xf32> to vector<2x32xf32>
    %270 = vector.extract_strided_slice %267 {offsets = [0, 64], sizes = [2, 32], strides = [1, 1]} : vector<2x128xf32> to vector<2x32xf32>
    %271 = vector.extract_strided_slice %267 {offsets = [0, 96], sizes = [2, 32], strides = [1, 1]} : vector<2x128xf32> to vector<2x32xf32>
    %272 = arith.mulf %269, %227 : vector<2x32xf32>
    %273 = arith.mulf %268, %270 : vector<2x32xf32>
    %274 = arith.addf %272, %273 : vector<2x32xf32>
    %275 = math.tanh %274 : vector<2x32xf32>
    %276 = arith.mulf %271, %275 : vector<2x32xf32>
    %277 = arith.truncf %276 : vector<2x32xf32> to vector<2x32xbf16>
    %c0_106 = arith.constant 0 : index
    %c0_107 = arith.constant 0 : index
    %278 = vector.load %arg3[%c0_106, %c0_107] : memref<64x128xbf16, #tpu.memory_space<vmem>>, vector<32x128xbf16>
    %cst_108 = arith.constant dense<0.000000e+00> : vector<2x128xf32>
    %279 = tpu.matmul %277, %278, %cst_108 {dimension_numbers = #tpu.dot_dimension_numbers<[1], [0], [0], [1], [0, 0, 1, 1], [], []>} : vector<2x32xbf16>, vector<32x128xbf16>, vector<2x128xf32> -> vector<2x128xf32>
    %280 = arith.truncf %252 : vector<2x32xf32> to vector<2x32xbf16>
    %c32_109 = arith.constant 32 : index
    %c0_110 = arith.constant 0 : index
    %281 = vector.load %arg3[%c32_109, %c0_110] : memref<64x128xbf16, #tpu.memory_space<vmem>>, vector<32x128xbf16>
    %cst_111 = arith.constant dense<0.000000e+00> : vector<2x128xf32>
    %282 = tpu.matmul %280, %281, %cst_111 {dimension_numbers = #tpu.dot_dimension_numbers<[1], [0], [0], [1], [0, 0, 1, 1], [], []>} : vector<2x32xbf16>, vector<32x128xbf16>, vector<2x128xf32> -> vector<2x128xf32>
    %283 = arith.addf %279, %282 : vector<2x128xf32>
    %c0_112 = arith.constant 0 : index
    %c0_113 = arith.constant 0 : index
    %284 = vector.load %arg6[%c0_112, %c0_113] : memref<1x128xf32, #tpu.memory_space<vmem>>, vector<1x128xf32>
    %285 = vector.broadcast %284 : vector<1x128xf32> to vector<2x128xf32>
    %286 = arith.addf %283, %285 : vector<2x128xf32>
    %287 = arith.mulf %286, %8 : vector<2x128xf32>
    %288 = math.tanh %287 : vector<2x128xf32>
    %289 = arith.mulf %288, %8 : vector<2x128xf32>
    %290 = arith.addf %289, %11 : vector<2x128xf32>
    %291 = vector.extract_strided_slice %290 {offsets = [0, 0], sizes = [2, 32], strides = [1, 1]} : vector<2x128xf32> to vector<2x32xf32>
    %292 = vector.extract_strided_slice %290 {offsets = [0, 32], sizes = [2, 32], strides = [1, 1]} : vector<2x128xf32> to vector<2x32xf32>
    %293 = vector.extract_strided_slice %290 {offsets = [0, 64], sizes = [2, 32], strides = [1, 1]} : vector<2x128xf32> to vector<2x32xf32>
    %294 = vector.extract_strided_slice %290 {offsets = [0, 96], sizes = [2, 32], strides = [1, 1]} : vector<2x128xf32> to vector<2x32xf32>
    %295 = arith.mulf %292, %250 : vector<2x32xf32>
    %296 = arith.mulf %291, %293 : vector<2x32xf32>
    %297 = arith.addf %295, %296 : vector<2x32xf32>
    %298 = math.tanh %297 : vector<2x32xf32>
    %299 = arith.mulf %294, %298 : vector<2x32xf32>
    %c6 = arith.constant 6 : index
    %c0_114 = arith.constant 0 : index
    %c0_115 = arith.constant 0 : index
    %300 = vector.load %arg1[%c6, %c0_114, %c0_115] : memref<8x2x32xbf16, #tpu.memory_space<vmem>>, vector<1x2x32xbf16>
    %301 = vector.shape_cast %300 : vector<1x2x32xbf16> to vector<2x32xbf16>
    %c0_116 = arith.constant 0 : index
    %c0_117 = arith.constant 0 : index
    %302 = vector.load %arg2[%c0_116, %c0_117] : memref<64x128xbf16, #tpu.memory_space<vmem>>, vector<32x128xbf16>
    %cst_118 = arith.constant dense<0.000000e+00> : vector<2x128xf32>
    %303 = tpu.matmul %301, %302, %cst_118 {dimension_numbers = #tpu.dot_dimension_numbers<[1], [0], [0], [1], [0, 0, 1, 1], [], []>} : vector<2x32xbf16>, vector<32x128xbf16>, vector<2x128xf32> -> vector<2x128xf32>
    %304 = arith.truncf %276 : vector<2x32xf32> to vector<2x32xbf16>
    %c32_119 = arith.constant 32 : index
    %c0_120 = arith.constant 0 : index
    %305 = vector.load %arg2[%c32_119, %c0_120] : memref<64x128xbf16, #tpu.memory_space<vmem>>, vector<32x128xbf16>
    %cst_121 = arith.constant dense<0.000000e+00> : vector<2x128xf32>
    %306 = tpu.matmul %304, %305, %cst_121 {dimension_numbers = #tpu.dot_dimension_numbers<[1], [0], [0], [1], [0, 0, 1, 1], [], []>} : vector<2x32xbf16>, vector<32x128xbf16>, vector<2x128xf32> -> vector<2x128xf32>
    %307 = arith.addf %303, %306 : vector<2x128xf32>
    %c0_122 = arith.constant 0 : index
    %c0_123 = arith.constant 0 : index
    %308 = vector.load %arg5[%c0_122, %c0_123] : memref<1x128xf32, #tpu.memory_space<vmem>>, vector<1x128xf32>
    %309 = vector.broadcast %308 : vector<1x128xf32> to vector<2x128xf32>
    %310 = arith.addf %307, %309 : vector<2x128xf32>
    %311 = arith.mulf %310, %8 : vector<2x128xf32>
    %312 = math.tanh %311 : vector<2x128xf32>
    %313 = arith.mulf %312, %8 : vector<2x128xf32>
    %314 = arith.addf %313, %11 : vector<2x128xf32>
    %315 = vector.extract_strided_slice %314 {offsets = [0, 0], sizes = [2, 32], strides = [1, 1]} : vector<2x128xf32> to vector<2x32xf32>
    %316 = vector.extract_strided_slice %314 {offsets = [0, 32], sizes = [2, 32], strides = [1, 1]} : vector<2x128xf32> to vector<2x32xf32>
    %317 = vector.extract_strided_slice %314 {offsets = [0, 64], sizes = [2, 32], strides = [1, 1]} : vector<2x128xf32> to vector<2x32xf32>
    %318 = vector.extract_strided_slice %314 {offsets = [0, 96], sizes = [2, 32], strides = [1, 1]} : vector<2x128xf32> to vector<2x32xf32>
    %319 = arith.mulf %316, %274 : vector<2x32xf32>
    %320 = arith.mulf %315, %317 : vector<2x32xf32>
    %321 = arith.addf %319, %320 : vector<2x32xf32>
    %322 = math.tanh %321 : vector<2x32xf32>
    %323 = arith.mulf %318, %322 : vector<2x32xf32>
    %324 = arith.truncf %323 : vector<2x32xf32> to vector<2x32xbf16>
    %c0_124 = arith.constant 0 : index
    %c0_125 = arith.constant 0 : index
    %325 = vector.load %arg3[%c0_124, %c0_125] : memref<64x128xbf16, #tpu.memory_space<vmem>>, vector<32x128xbf16>
    %cst_126 = arith.constant dense<0.000000e+00> : vector<2x128xf32>
    %326 = tpu.matmul %324, %325, %cst_126 {dimension_numbers = #tpu.dot_dimension_numbers<[1], [0], [0], [1], [0, 0, 1, 1], [], []>} : vector<2x32xbf16>, vector<32x128xbf16>, vector<2x128xf32> -> vector<2x128xf32>
    %327 = arith.truncf %299 : vector<2x32xf32> to vector<2x32xbf16>
    %c32_127 = arith.constant 32 : index
    %c0_128 = arith.constant 0 : index
    %328 = vector.load %arg3[%c32_127, %c0_128] : memref<64x128xbf16, #tpu.memory_space<vmem>>, vector<32x128xbf16>
    %cst_129 = arith.constant dense<0.000000e+00> : vector<2x128xf32>
    %329 = tpu.matmul %327, %328, %cst_129 {dimension_numbers = #tpu.dot_dimension_numbers<[1], [0], [0], [1], [0, 0, 1, 1], [], []>} : vector<2x32xbf16>, vector<32x128xbf16>, vector<2x128xf32> -> vector<2x128xf32>
    %330 = arith.addf %326, %329 : vector<2x128xf32>
    %c0_130 = arith.constant 0 : index
    %c0_131 = arith.constant 0 : index
    %331 = vector.load %arg6[%c0_130, %c0_131] : memref<1x128xf32, #tpu.memory_space<vmem>>, vector<1x128xf32>
    %332 = vector.broadcast %331 : vector<1x128xf32> to vector<2x128xf32>
    %333 = arith.addf %330, %332 : vector<2x128xf32>
    %334 = arith.mulf %333, %8 : vector<2x128xf32>
    %335 = math.tanh %334 : vector<2x128xf32>
    %336 = arith.mulf %335, %8 : vector<2x128xf32>
    %337 = arith.addf %336, %11 : vector<2x128xf32>
    %338 = vector.extract_strided_slice %337 {offsets = [0, 0], sizes = [2, 32], strides = [1, 1]} : vector<2x128xf32> to vector<2x32xf32>
    %339 = vector.extract_strided_slice %337 {offsets = [0, 32], sizes = [2, 32], strides = [1, 1]} : vector<2x128xf32> to vector<2x32xf32>
    %340 = vector.extract_strided_slice %337 {offsets = [0, 64], sizes = [2, 32], strides = [1, 1]} : vector<2x128xf32> to vector<2x32xf32>
    %341 = vector.extract_strided_slice %337 {offsets = [0, 96], sizes = [2, 32], strides = [1, 1]} : vector<2x128xf32> to vector<2x32xf32>
    %342 = arith.mulf %339, %297 : vector<2x32xf32>
    %343 = arith.mulf %338, %340 : vector<2x32xf32>
    %344 = arith.addf %342, %343 : vector<2x32xf32>
    %345 = math.tanh %344 : vector<2x32xf32>
    %346 = arith.mulf %341, %345 : vector<2x32xf32>
    %c7 = arith.constant 7 : index
    %c0_132 = arith.constant 0 : index
    %c0_133 = arith.constant 0 : index
    %347 = vector.load %arg1[%c7, %c0_132, %c0_133] : memref<8x2x32xbf16, #tpu.memory_space<vmem>>, vector<1x2x32xbf16>
    %348 = vector.shape_cast %347 : vector<1x2x32xbf16> to vector<2x32xbf16>
    %c0_134 = arith.constant 0 : index
    %c0_135 = arith.constant 0 : index
    %349 = vector.load %arg2[%c0_134, %c0_135] : memref<64x128xbf16, #tpu.memory_space<vmem>>, vector<32x128xbf16>
    %cst_136 = arith.constant dense<0.000000e+00> : vector<2x128xf32>
    %350 = tpu.matmul %348, %349, %cst_136 {dimension_numbers = #tpu.dot_dimension_numbers<[1], [0], [0], [1], [0, 0, 1, 1], [], []>} : vector<2x32xbf16>, vector<32x128xbf16>, vector<2x128xf32> -> vector<2x128xf32>
    %351 = arith.truncf %323 : vector<2x32xf32> to vector<2x32xbf16>
    %c32_137 = arith.constant 32 : index
    %c0_138 = arith.constant 0 : index
    %352 = vector.load %arg2[%c32_137, %c0_138] : memref<64x128xbf16, #tpu.memory_space<vmem>>, vector<32x128xbf16>
    %cst_139 = arith.constant dense<0.000000e+00> : vector<2x128xf32>
    %353 = tpu.matmul %351, %352, %cst_139 {dimension_numbers = #tpu.dot_dimension_numbers<[1], [0], [0], [1], [0, 0, 1, 1], [], []>} : vector<2x32xbf16>, vector<32x128xbf16>, vector<2x128xf32> -> vector<2x128xf32>
    %354 = arith.addf %350, %353 : vector<2x128xf32>
    %c0_140 = arith.constant 0 : index
    %c0_141 = arith.constant 0 : index
    %355 = vector.load %arg5[%c0_140, %c0_141] : memref<1x128xf32, #tpu.memory_space<vmem>>, vector<1x128xf32>
    %356 = vector.broadcast %355 : vector<1x128xf32> to vector<2x128xf32>
    %357 = arith.addf %354, %356 : vector<2x128xf32>
    %358 = arith.mulf %357, %8 : vector<2x128xf32>
    %359 = math.tanh %358 : vector<2x128xf32>
    %360 = arith.mulf %359, %8 : vector<2x128xf32>
    %361 = arith.addf %360, %11 : vector<2x128xf32>
    %362 = vector.extract_strided_slice %361 {offsets = [0, 0], sizes = [2, 32], strides = [1, 1]} : vector<2x128xf32> to vector<2x32xf32>
    %363 = vector.extract_strided_slice %361 {offsets = [0, 32], sizes = [2, 32], strides = [1, 1]} : vector<2x128xf32> to vector<2x32xf32>
    %364 = vector.extract_strided_slice %361 {offsets = [0, 64], sizes = [2, 32], strides = [1, 1]} : vector<2x128xf32> to vector<2x32xf32>
    %365 = vector.extract_strided_slice %361 {offsets = [0, 96], sizes = [2, 32], strides = [1, 1]} : vector<2x128xf32> to vector<2x32xf32>
    %366 = arith.mulf %363, %321 : vector<2x32xf32>
    %367 = arith.mulf %362, %364 : vector<2x32xf32>
    %368 = arith.addf %366, %367 : vector<2x32xf32>
    %369 = math.tanh %368 : vector<2x32xf32>
    %370 = arith.mulf %365, %369 : vector<2x32xf32>
    %371 = arith.truncf %370 : vector<2x32xf32> to vector<2x32xbf16>
    %c0_142 = arith.constant 0 : index
    %c0_143 = arith.constant 0 : index
    %372 = vector.load %arg3[%c0_142, %c0_143] : memref<64x128xbf16, #tpu.memory_space<vmem>>, vector<32x128xbf16>
    %cst_144 = arith.constant dense<0.000000e+00> : vector<2x128xf32>
    %373 = tpu.matmul %371, %372, %cst_144 {dimension_numbers = #tpu.dot_dimension_numbers<[1], [0], [0], [1], [0, 0, 1, 1], [], []>} : vector<2x32xbf16>, vector<32x128xbf16>, vector<2x128xf32> -> vector<2x128xf32>
    %374 = arith.truncf %346 : vector<2x32xf32> to vector<2x32xbf16>
    %c32_145 = arith.constant 32 : index
    %c0_146 = arith.constant 0 : index
    %375 = vector.load %arg3[%c32_145, %c0_146] : memref<64x128xbf16, #tpu.memory_space<vmem>>, vector<32x128xbf16>
    %cst_147 = arith.constant dense<0.000000e+00> : vector<2x128xf32>
    %376 = tpu.matmul %374, %375, %cst_147 {dimension_numbers = #tpu.dot_dimension_numbers<[1], [0], [0], [1], [0, 0, 1, 1], [], []>} : vector<2x32xbf16>, vector<32x128xbf16>, vector<2x128xf32> -> vector<2x128xf32>
    %377 = arith.addf %373, %376 : vector<2x128xf32>
    %c0_148 = arith.constant 0 : index
    %c0_149 = arith.constant 0 : index
    %378 = vector.load %arg6[%c0_148, %c0_149] : memref<1x128xf32, #tpu.memory_space<vmem>>, vector<1x128xf32>
    %379 = vector.broadcast %378 : vector<1x128xf32> to vector<2x128xf32>
    %380 = arith.addf %377, %379 : vector<2x128xf32>
    %381 = arith.mulf %380, %8 : vector<2x128xf32>
    %382 = math.tanh %381 : vector<2x128xf32>
    %383 = arith.mulf %382, %8 : vector<2x128xf32>
    %384 = arith.addf %383, %11 : vector<2x128xf32>
    %385 = vector.extract_strided_slice %384 {offsets = [0, 0], sizes = [2, 32], strides = [1, 1]} : vector<2x128xf32> to vector<2x32xf32>
    %386 = vector.extract_strided_slice %384 {offsets = [0, 32], sizes = [2, 32], strides = [1, 1]} : vector<2x128xf32> to vector<2x32xf32>
    %387 = vector.extract_strided_slice %384 {offsets = [0, 64], sizes = [2, 32], strides = [1, 1]} : vector<2x128xf32> to vector<2x32xf32>
    %388 = vector.extract_strided_slice %384 {offsets = [0, 96], sizes = [2, 32], strides = [1, 1]} : vector<2x128xf32> to vector<2x32xf32>
    %389 = arith.mulf %386, %344 : vector<2x32xf32>
    %390 = arith.mulf %385, %387 : vector<2x32xf32>
    %391 = arith.addf %389, %390 : vector<2x32xf32>
    %392 = math.tanh %391 : vector<2x32xf32>
    %393 = arith.mulf %388, %392 : vector<2x32xf32>
    %394 = arith.truncf %393 : vector<2x32xf32> to vector<2x32xbf16>
    %c0_150 = arith.constant 0 : index
    %c0_151 = arith.constant 0 : index
    %395 = vector.load %arg7[%c0_150, %c0_151] : memref<32x64xbf16, #tpu.memory_space<vmem>>, vector<32x64xbf16>
    %cst_152 = arith.constant dense<0.000000e+00> : vector<2x64xf32>
    %396 = tpu.matmul %394, %395, %cst_152 {dimension_numbers = #tpu.dot_dimension_numbers<[1], [0], [0], [1], [0, 0, 1, 1], [], []>} : vector<2x32xbf16>, vector<32x64xbf16>, vector<2x64xf32> -> vector<2x64xf32>
    %c0_153 = arith.constant 0 : index
    %c0_154 = arith.constant 0 : index
    %397 = vector.load %arg8[%c0_153, %c0_154] : memref<1x64xf32, #tpu.memory_space<vmem>>, vector<1x64xf32>
    %398 = vector.broadcast %397 : vector<1x64xf32> to vector<2x64xf32>
    %399 = arith.addf %396, %398 : vector<2x64xf32>
    %c0_155 = arith.constant 0 : index
    %c0_156 = arith.constant 0 : index
    %c0_157 = arith.constant 0 : index
    %400 = vector.load %arg9[%c0_155, %c0_156, %c0_157] : memref<180x2x64xf32, #tpu.memory_space<vmem>>, vector<1x2x64xf32>
    %401 = vector.shape_cast %400 : vector<1x2x64xf32> to vector<2x64xf32>
    %402 = vector.shape_cast %399 : vector<2x64xf32> to vector<1x2x64xf32>
    tpu.vector_store %arg9[%c0_155, %c0_156, %c0_157], %402 {strides = array<i32>} : memref<180x2x64xf32, #tpu.memory_space<vmem>>, vector<1x2x64xf32>,
    %403 = tpu.iota {dimensions = array<i32: 1>} : vector<2x32xi32>
    %404 = arith.sitofp %403 : vector<2x32xi32> to vector<2x32xf32>
    %cst_158 = arith.constant dense<0xFF800000> : vector<2xf32>
    %405 = vector.multi_reduction <maximumf>, %393, %cst_158 [1] : vector<2x32xf32> to vector<2xf32>
    %406 = vector.shape_cast %405 : vector<2xf32> to vector<2x1xf32>
    %407 = vector.broadcast %406 : vector<2x1xf32> to vector<2x32xf32>
    %408 = arith.cmpf oeq, %393, %407 : vector<2x32xf32>
    %cst_159 = arith.constant 3.200000e+01 : f32
    %409 = vector.broadcast %cst_159 : f32 to vector<2x32xf32>
    %410 = arith.select %408, %404, %409 : vector<2x32xi1>, vector<2x32xf32>
    %cst_160 = arith.constant dense<0x7F800000> : vector<2xf32>
    %411 = vector.multi_reduction <minimumf>, %410, %cst_160 [1] : vector<2x32xf32> to vector<2xf32>
    %412 = vector.shape_cast %411 : vector<2xf32> to vector<2x1xf32>
    %413 = vector.broadcast %412 : vector<2x1xf32> to vector<2x64xf32>
    %414 = arith.cmpf oeq, %13, %413 : vector<2x64xf32>
    %415 = arith.extui %414 : vector<2x64xi1> to vector<2x64xi32>
    %416 = arith.sitofp %415 : vector<2x64xi32> to vector<2x64xf32>
    %417 = arith.truncf %416 : vector<2x64xf32> to vector<2x64xbf16>
    %c0_i32 = arith.constant 0 : i32
    %c179_i32 = arith.constant 179 : i32
    %418 = arith.addi %c0_i32, %c179_i32 : i32
    %c1_i32 = arith.constant 1 : i32
    %419:5 = scf.for %arg10 = %c0_i32 to %418 step %c1_i32 iter_args(%arg11 = %370, %arg12 = %393, %arg13 = %368, %arg14 = %391, %arg15 = %417) -> (vector<2x32xf32>, vector<2x32xf32>, vector<2x32xf32>, vector<2x32xf32>, vector<2x64xbf16>)  : i32 {
      %c0_162 = arith.constant 0 : index
      %c0_163 = arith.constant 0 : index
      %420 = vector.load %arg4[%c0_162, %c0_163] : memref<64x128xbf16, #tpu.memory_space<vmem>>, vector<64x128xbf16>
      %cst_164 = arith.constant dense<0.000000e+00> : vector<2x128xf32>
      %421 = tpu.matmul %arg15, %420, %cst_164 {dimension_numbers = #tpu.dot_dimension_numbers<[1], [0], [0], [1], [0, 0, 1, 1], [], []>} : vector<2x64xbf16>, vector<64x128xbf16>, vector<2x128xf32> -> vector<2x128xf32>
      %422 = arith.truncf %arg11 : vector<2x32xf32> to vector<2x32xbf16>
      %c32_165 = arith.constant 32 : index
      %c0_166 = arith.constant 0 : index
      %423 = vector.load %arg2[%c32_165, %c0_166] : memref<64x128xbf16, #tpu.memory_space<vmem>>, vector<32x128xbf16>
      %cst_167 = arith.constant dense<0.000000e+00> : vector<2x128xf32>
      %424 = tpu.matmul %422, %423, %cst_167 {dimension_numbers = #tpu.dot_dimension_numbers<[1], [0], [0], [1], [0, 0, 1, 1], [], []>} : vector<2x32xbf16>, vector<32x128xbf16>, vector<2x128xf32> -> vector<2x128xf32>
      %425 = arith.addf %421, %424 : vector<2x128xf32>
      %c0_168 = arith.constant 0 : index
      %c0_169 = arith.constant 0 : index
      %426 = vector.load %arg5[%c0_168, %c0_169] : memref<1x128xf32, #tpu.memory_space<vmem>>, vector<1x128xf32>
      %427 = vector.broadcast %426 : vector<1x128xf32> to vector<2x128xf32>
      %428 = arith.addf %425, %427 : vector<2x128xf32>
      %429 = arith.mulf %428, %8 : vector<2x128xf32>
      %430 = math.tanh %429 : vector<2x128xf32>
      %431 = arith.mulf %430, %8 : vector<2x128xf32>
      %432 = arith.addf %431, %11 : vector<2x128xf32>
      %433 = vector.extract_strided_slice %432 {offsets = [0, 0], sizes = [2, 32], strides = [1, 1]} : vector<2x128xf32> to vector<2x32xf32>
      %434 = vector.extract_strided_slice %432 {offsets = [0, 32], sizes = [2, 32], strides = [1, 1]} : vector<2x128xf32> to vector<2x32xf32>
      %435 = vector.extract_strided_slice %432 {offsets = [0, 64], sizes = [2, 32], strides = [1, 1]} : vector<2x128xf32> to vector<2x32xf32>
      %436 = vector.extract_strided_slice %432 {offsets = [0, 96], sizes = [2, 32], strides = [1, 1]} : vector<2x128xf32> to vector<2x32xf32>
      %437 = arith.mulf %434, %arg13 : vector<2x32xf32>
      %438 = arith.mulf %433, %435 : vector<2x32xf32>
      %439 = arith.addf %437, %438 : vector<2x32xf32>
      %440 = math.tanh %439 : vector<2x32xf32>
      %441 = arith.mulf %436, %440 : vector<2x32xf32>
      %442 = arith.truncf %441 : vector<2x32xf32> to vector<2x32xbf16>
      %c0_170 = arith.constant 0 : index
      %c0_171 = arith.constant 0 : index
      %443 = vector.load %arg3[%c0_170, %c0_171] : memref<64x128xbf16, #tpu.memory_space<vmem>>, vector<32x128xbf16>
      %cst_172 = arith.constant dense<0.000000e+00> : vector<2x128xf32>
      %444 = tpu.matmul %442, %443, %cst_172 {dimension_numbers = #tpu.dot_dimension_numbers<[1], [0], [0], [1], [0, 0, 1, 1], [], []>} : vector<2x32xbf16>, vector<32x128xbf16>, vector<2x128xf32> -> vector<2x128xf32>
      %445 = arith.truncf %arg12 : vector<2x32xf32> to vector<2x32xbf16>
      %c32_173 = arith.constant 32 : index
      %c0_174 = arith.constant 0 : index
      %446 = vector.load %arg3[%c32_173, %c0_174] : memref<64x128xbf16, #tpu.memory_space<vmem>>, vector<32x128xbf16>
      %cst_175 = arith.constant dense<0.000000e+00> : vector<2x128xf32>
      %447 = tpu.matmul %445, %446, %cst_175 {dimension_numbers = #tpu.dot_dimension_numbers<[1], [0], [0], [1], [0, 0, 1, 1], [], []>} : vector<2x32xbf16>, vector<32x128xbf16>, vector<2x128xf32> -> vector<2x128xf32>
      %448 = arith.addf %444, %447 : vector<2x128xf32>
      %c0_176 = arith.constant 0 : index
      %c0_177 = arith.constant 0 : index
      %449 = vector.load %arg6[%c0_176, %c0_177] : memref<1x128xf32, #tpu.memory_space<vmem>>, vector<1x128xf32>
      %450 = vector.broadcast %449 : vector<1x128xf32> to vector<2x128xf32>
      %451 = arith.addf %448, %450 : vector<2x128xf32>
      %452 = arith.mulf %451, %8 : vector<2x128xf32>
      %453 = math.tanh %452 : vector<2x128xf32>
      %454 = arith.mulf %453, %8 : vector<2x128xf32>
      %455 = arith.addf %454, %11 : vector<2x128xf32>
      %456 = vector.extract_strided_slice %455 {offsets = [0, 0], sizes = [2, 32], strides = [1, 1]} : vector<2x128xf32> to vector<2x32xf32>
      %457 = vector.extract_strided_slice %455 {offsets = [0, 32], sizes = [2, 32], strides = [1, 1]} : vector<2x128xf32> to vector<2x32xf32>
      %458 = vector.extract_strided_slice %455 {offsets = [0, 64], sizes = [2, 32], strides = [1, 1]} : vector<2x128xf32> to vector<2x32xf32>
      %459 = vector.extract_strided_slice %455 {offsets = [0, 96], sizes = [2, 32], strides = [1, 1]} : vector<2x128xf32> to vector<2x32xf32>
      %460 = arith.mulf %457, %arg14 : vector<2x32xf32>
      %461 = arith.mulf %456, %458 : vector<2x32xf32>
      %462 = arith.addf %460, %461 : vector<2x32xf32>
      %463 = math.tanh %462 : vector<2x32xf32>
      %464 = arith.mulf %459, %463 : vector<2x32xf32>
      %465 = arith.truncf %464 : vector<2x32xf32> to vector<2x32xbf16>
      %c0_178 = arith.constant 0 : index
      %c0_179 = arith.constant 0 : index
      %466 = vector.load %arg7[%c0_178, %c0_179] : memref<32x64xbf16, #tpu.memory_space<vmem>>, vector<32x64xbf16>
      %cst_180 = arith.constant dense<0.000000e+00> : vector<2x64xf32>
      %467 = tpu.matmul %465, %466, %cst_180 {dimension_numbers = #tpu.dot_dimension_numbers<[1], [0], [0], [1], [0, 0, 1, 1], [], []>} : vector<2x32xbf16>, vector<32x64xbf16>, vector<2x64xf32> -> vector<2x64xf32>
      %c0_181 = arith.constant 0 : index
      %c0_182 = arith.constant 0 : index
      %468 = vector.load %arg8[%c0_181, %c0_182] : memref<1x64xf32, #tpu.memory_space<vmem>>, vector<1x64xf32>
      %469 = vector.broadcast %468 : vector<1x64xf32> to vector<2x64xf32>
      %470 = arith.addf %467, %469 : vector<2x64xf32>
      %c1_i32_183 = arith.constant 1 : i32
      %471 = arith.addi %arg10, %c1_i32_183 : i32
      %472 = arith.index_cast %471 : i32 to index
      %c0_184 = arith.constant 0 : index
      %c0_185 = arith.constant 0 : index
      %473 = vector.load %arg9[%472, %c0_184, %c0_185] : memref<180x2x64xf32, #tpu.memory_space<vmem>>, vector<1x2x64xf32>
      %474 = vector.shape_cast %473 : vector<1x2x64xf32> to vector<2x64xf32>
      %475 = vector.shape_cast %470 : vector<2x64xf32> to vector<1x2x64xf32>
      tpu.vector_store %arg9[%472, %c0_184, %c0_185], %475 {strides = array<i32>} : memref<180x2x64xf32, #tpu.memory_space<vmem>>, vector<1x2x64xf32>,
      %cst_186 = arith.constant dense<0xFF800000> : vector<2xf32>
      %476 = vector.multi_reduction <maximumf>, %470, %cst_186 [1] : vector<2x64xf32> to vector<2xf32>
      %477 = vector.shape_cast %476 : vector<2xf32> to vector<2x1xf32>
      %478 = vector.broadcast %477 : vector<2x1xf32> to vector<2x64xf32>
      %479 = arith.cmpf oeq, %470, %478 : vector<2x64xf32>
      %cst_187 = arith.constant 6.400000e+01 : f32
      %480 = vector.broadcast %cst_187 : f32 to vector<2x64xf32>
      %481 = arith.select %479, %13, %480 : vector<2x64xi1>, vector<2x64xf32>
      %cst_188 = arith.constant dense<0x7F800000> : vector<2xf32>
      %482 = vector.multi_reduction <minimumf>, %481, %cst_188 [1] : vector<2x64xf32> to vector<2xf32>
      %483 = vector.shape_cast %482 : vector<2xf32> to vector<2x1xf32>
      %484 = vector.broadcast %483 : vector<2x1xf32> to vector<2x64xf32>
      %485 = arith.cmpf oeq, %13, %484 : vector<2x64xf32>
      %486 = arith.extui %485 : vector<2x64xi1> to vector<2x64xi32>
      %487 = arith.sitofp %486 : vector<2x64xi32> to vector<2x64xf32>
      %488 = arith.truncf %487 : vector<2x64xf32> to vector<2x64xbf16>
      scf.yield %441, %464, %439, %462, %488 : vector<2x32xf32>, vector<2x32xf32>, vector<2x32xf32>, vector<2x32xf32>, vector<2x64xbf16>
    }
    %c179_i32_161 = arith.constant 179 : i32
    return
  }
  func.func @transform_0(%arg0: i32) -> (i32, i32, i32) {
    %c0_i32 = arith.constant 0 : i32
    %c0_i32_0 = arith.constant 0 : i32
    %c0_i32_1 = arith.constant 0 : i32
    %c0_i32_2 = arith.constant 0 : i32
    return %c0_i32, %c0_i32_0, %c0_i32_1 : i32, i32, i32
  }
  func.func @transform_1(%arg0: i32) -> (i32, i32) {
    %c0_i32 = arith.constant 0 : i32
    %c0_i32_0 = arith.constant 0 : i32
    %c0_i32_1 = arith.constant 0 : i32
    return %c0_i32, %c0_i32_0 : i32, i32
  }
  func.func @transform_2(%arg0: i32) -> (i32, i32) {
    %c0_i32 = arith.constant 0 : i32
    %c0_i32_0 = arith.constant 0 : i32
    %c0_i32_1 = arith.constant 0 : i32
    return %c0_i32, %c0_i32_0 : i32, i32
  }
  func.func @transform_3(%arg0: i32) -> (i32, i32) {
    %c0_i32 = arith.constant 0 : i32
    %c0_i32_0 = arith.constant 0 : i32
    %c0_i32_1 = arith.constant 0 : i32
    return %c0_i32, %c0_i32_0 : i32, i32
  }
  func.func @transform_4(%arg0: i32) -> (i32, i32) {
    %c0_i32 = arith.constant 0 : i32
    %c0_i32_0 = arith.constant 0 : i32
    %c0_i32_1 = arith.constant 0 : i32
    return %c0_i32, %c0_i32_0 : i32, i32
  }
  func.func @transform_5(%arg0: i32) -> (i32, i32) {
    %c0_i32 = arith.constant 0 : i32
    %c0_i32_0 = arith.constant 0 : i32
    %c0_i32_1 = arith.constant 0 : i32
    return %c0_i32, %c0_i32_0 : i32, i32
  }
  func.func @transform_6(%arg0: i32) -> (i32, i32) {
    %c0_i32 = arith.constant 0 : i32
    %c0_i32_0 = arith.constant 0 : i32
    %c0_i32_1 = arith.constant 0 : i32
    return %c0_i32, %c0_i32_0 : i32, i32
  }
  func.func @transform_7(%arg0: i32) -> (i32, i32) {
    %c0_i32 = arith.constant 0 : i32
    %c0_i32_0 = arith.constant 0 : i32
    %c0_i32_1 = arith.constant 0 : i32
    return %c0_i32, %c0_i32_0 : i32, i32
  }
  func.func @transform_8(%arg0: i32) -> (i32, i32, i32) {
    %c0_i32 = arith.constant 0 : i32
    %c0_i32_0 = arith.constant 0 : i32
    %c0_i32_1 = arith.constant 0 : i32
    %c0_i32_2 = arith.constant 0 : i32
    return %c0_i32, %c0_i32_0, %c0_i32_1 : i32, i32, i32
  }
}

</mosaic_0001>

<bundles_post_ra>
// kernel: forward.1
= control target key start
LH: loop header
LB: loop body
LE: loop exit
PB: predicated region body
PF: predicated region fallthrough
CT: control target
= control target key end

     0   :  { %v3142_v0 = vmov 0.0   ;;  %vm3143_vm0 = vmmov 0   ;;  %vm59_vm1 = vcmask 261120   ;;  %v3144_v6 = vmov 0   ;;  %s3146_s17 = smov 64   ;;  %s3147_s18 = smov 32   ;;  %s3899_s3 = inlined_call_operand.vmem [shape: bf16[64,128], index: 3, kind: input, shape index: {}]   ;;  %s3900_s1 = inlined_call_operand.vmem [shape: bf16[64,128], index: 1, kind: input, shape index: {}]   ;;  %s3901_s0 = inlined_call_operand.vmem [shape: bf16[8,2,32], index: 0, kind: input, shape index: {}]   ;;  %s3902_s4 = inlined_call_operand.vmem [shape: f32[1,128], index: 4, kind: input, shape index: {}]   ;;  %s3903_s2 = inlined_call_operand.vmem [shape: bf16[64,128], index: 2, kind: input, shape index: {}]   ;;  %s3904_s5 = inlined_call_operand.vmem [shape: f32[1,128], index: 5, kind: input, shape index: {}]   ;;  %s3905_s6 = inlined_call_operand.vmem [shape: bf16[32,64], index: 6, kind: input, shape index: {}]   ;;  %s3906_s7 = inlined_call_operand.vmem [shape: f32[1,64], index: 7, kind: input, shape index: {}]   ;;  %s3907_s8 = inlined_call_operand.vmem [shape: f32[180,2,64], index: 8, kind: output, shape index: {}]  }
   0x1   :  { %2623 = vmatprep.subr.bf16.mxu0 %v3142_v0  ;;  %2631 = vmatprep.subr.bf16.mxu1 %v3142_v0  ;;  %v3203_v1 = vld [vmem:[%s3900_s1 + $0x18] sm:$0xff]   ;;  %v3208_v2 = vld [vmem:[%s3900_s1 + $0x8] sm:$0xff]   ;;  %v3218_v3 = vld [vmem:[%s3900_s1 + $0x10] sm:$0xff]   ;;  %v30_v7 = vlaneseq  ;;  %v3145_v15 = vmov 0.5   ;;  %vm1968_vm5 = vcmask 1042176   ;;  %s3148_s26 = smov 96  }
   0x2   :  { %2627 = vmatprep.mubr.msk.bf16.mxu0 %vm3143_vm0, %v3142_v0  ;;  %2635 = vmatprep.mubr.msk.bf16.mxu1 %vm3143_vm0, %v3142_v0  ;;  %v3225_v4 = vld [vmem:[%s3900_s1] sm:$0xff]   ;;  %v3273_v33 = vld [vmem:[%s3903_s2 + $0x18] sm:$0xff]   ;;  %v3278_v34 = vld [vmem:[%s3903_s2 + $0x10] sm:$0xff]   ;;  %vm1966_vm8 = vcmask 517120   ;;  %s3767_s29 = smov 0  }
   0x3   :  { %2624 = vmatpush3.bf16.msra.mxu0 %v3203_v1  ;;  %2632 = vmatpush3.bf16.msra.mxu1 %v3208_v2  ;;  %v38_v5 = vld [vmem:[%s3901_s0] sm:$0x1]  ;;  %v3240_v8 = vand.u32 127, %v30_v7  ;;  %v3284_v35 = vld [vmem:[%s3903_s2 + $0x8] sm:$0xff]   ;;  %v2444_v46 = vld [vmem:[%s3901_s0 + $0x1] sm:$0x1] }
   0x4   :  { %2625 = vmatprep.subr.bf16.mxu0 %v3142_v0  ;;  %2633 = vmatprep.subr.bf16.mxu1 %v3142_v0  ;;  %v3251_v12 = vld [vmem:[%s3902_s4] ss:$0 sm:$0xff] }
   0x5   :  { %vm32_vm2 = vcmp.ge.s32.totalorder %v3240_v8, 64  ;;  %vm33_vm3 = vcmp.lt.s32.totalorder %v3240_v8, 96  ;;  %v3291_v36 = vld [vmem:[%s3903_s2] sm:$0xff]  }
   0x6   :  { %vm3244_vm4 = vmand %vm32_vm2, %vm33_vm3  ;;  %v3333_v48 = vld [vmem:[%s3904_s5] ss:$0 sm:$0xff] }
   0x7   :  { %2626 = vmatpush3.bf16.msra.mxu0 %v3218_v3  ;;  %2634 = vmatpush3.bf16.msra.mxu1 %v3225_v4  ;;  %v3255_v16 = vsel %vm3244_vm4, 1.0, %v3145_v15  ;;  %v3261_v25 = vsel %vm3244_vm4, 0.0, %v3145_v15 }
   0x8   :  { %2639 = vmatprep.subr.bf16.mxu0 %v3142_v0  ;;  %2647 = vmatprep.subr.bf16.mxu1 %v3142_v0 }
   0xa   :  { %2628 = vmatmul.mubr.bf16.vlgmr.msra.gmra.mxu0 %v3144_v6  ;;  %2636 = vmatmul.mubr.msk.bf16.vlgmr.msra.gmra.mxu1 %vm59_vm1, %v38_v5 }
   0xb   :  { %2643 = vmatprep.mubr.msk.bf16.mxu0 %vm3143_vm0, %v3142_v0  ;;  %2651 = vmatprep.mubr.msk.bf16.mxu1 %vm3143_vm0, %v3142_v0 }
   0xc   :  { %2640 = vmatpush3.bf16.msra.mxu0 %v3273_v33  ;;  %2648 = vmatpush3.bf16.msra.mxu1 %v3284_v35 }
   0xd   :  { %2641 = vmatprep.subr.bf16.mxu0 %v3142_v0  ;;  %2649 = vmatprep.subr.bf16.mxu1 %v3142_v0 }
  0x10   :  { %2642 = vmatpush3.bf16.msra.mxu0 %v3278_v34  ;;  %2650 = vmatpush3.bf16.msra.mxu1 %v3291_v36 }
  0x11   :  { %2655 = vmatprep.subr.bf16.mxu0 %v3142_v0  ;;  %2663 = vmatprep.subr.bf16.mxu1 %v3142_v0 }
  0x13   :  { %2644 = vmatmul.mubr.bf16.vlgmr.msra.gmra.mxu0 %v3144_v6 }
  0x14   :  { %2656 = vmatpush3.bf16.msra.mxu0 %v3203_v1  ;;  %2659 = vmatprep.mubr.msk.bf16.mxu0 %vm3143_vm0, %v3142_v0 }
  0x15   :  { %2657 = vmatprep.subr.bf16.mxu0 %v3142_v0 }
  0x18   :  { %2658 = vmatpush3.bf16.msra.mxu0 %v3218_v3 }
  0x19   :  { %2671 = vmatprep.subr.bf16.mxu0 %v3142_v0 }
  0xca   :  { %v97_v9 = vpop.f32.mrf.mxu0  ;;  %v152_v11 = vpop.f32.mrf.mxu1 }
  0xcb   :  { %v153_v13 = vadd.f32 %v152_v11, %v97_v9 }
  0xcc   :  { %v2629_v14 = vpop.f32.mrf.mxu0  ;;  %v2637_v17 = vpop.f32.mrf.mxu1 }
  0xcd   :  { %v165_v18 = vadd.f32 %v3251_v12, %v153_v13 }
  0xce   :  { %v100_v19 = vpop.f32.mrf.mxu0  ;;  %v155_v20 = vpop.f32.mrf.mxu1 }
  0xcf   :  { %v166_v21 = vmul.f32 %v165_v18, %v3255_v16 }
  0xd0   :  { %v2630_v22 = vpop.f32.mrf.mxu0  ;;  %v2638_v23 = vpop.f32.mrf.mxu1 }
  0xd1   :  { %3000 = vtanh.f32 %v166_v21 }
  0xd3   :  { %v242_v41 = vpop.f32.mrf.mxu0 }
  0xd5   :  { %v2645_v42 = vpop.f32.mrf.mxu0 }
  0xd7   :  { %v245_v43 = vpop.f32.mrf.mxu0 }
  0xd9   :  { %v2646_v44 = vpop.f32.mrf.mxu0 }
  0xde   :  { %v3001_v24 = vpop.eup %3000 }
  0xdf   :  { %v168_v26 = vmul.f32 %v3001_v24, %v3255_v16 }
  0xe1   :  { %v169_v27 = vadd.f32 %v168_v26, %v3261_v25 }
  0xe3   :  { %172 = vrot.lane.b32.xlu0 %v169_v27, %s3146_s17  ;;  %v170_v30 = vmul.f32 0.0, %v169_v27 }
 0x155   :  { %v173_v28 = vpop.permute.xlu0 %172 }
 0x156   :  { %v175_v29 = vmul.f32 %v173_v28, %v169_v27 }
 0x158   :  { %177 = vrot.lane.b32.xlu0 %v175_v29, %s3147_s18 }
 0x1ca   :  { %v178_v31 = vpop.permute.xlu0 %177 }
 0x1cb   :  { %v3267_v32 = vadd.f32 %v178_v31, %v170_v30 }
 0x1cd   :  { %3002 = vtanh.f32 %v3267_v32 }
 0x1da   :  { %v3003_v37 = vpop.eup %3002 }
 0x1db   :  { %183 = vrot.lane.b32.xlu1 %v3003_v37, %s3146_s17 }
 0x24d   :  { %v184_v38 = vpop.permute.xlu1 %183 }
 0x24e   :  { %v186_v39 = vmul.f32 %v184_v38, %v169_v27 }
 0x250   :  { %v187_v40 = vpack.c.bf16 %v186_v39, %v186_v39 }
 0x252   :  { %249 = vrot.lane.b32.xlu1 %v187_v40, %s3147_s18 }
 0x2c4   :  { %v250_v45 = vpop.permute.xlu1 %249 }
 0x2c5   :  { %2652 = vmatmul.mubr.msk.bf16.vlgmr.msra.gmra.mxu1 %vm59_vm1, %v250_v45  ;;  %2660 = vmatmul.mubr.msk.bf16.vlgmr.msra.gmra.mxu0 %vm59_vm1, %v250_v45 }
 0x2c6   :  { %2664 = vmatpush3.bf16.msra.mxu1 %v3208_v2  ;;  %2667 = vmatprep.mubr.msk.bf16.mxu1 %vm3143_vm0, %v3142_v0 }
 0x2c7   :  { %2665 = vmatprep.subr.bf16.mxu1 %v3142_v0  ;;  %2672 = vmatpush3.bf16.msra.mxu0 %v3273_v33 }
 0x2c8   :  { %2673 = vmatprep.subr.bf16.mxu0 %v3142_v0  ;;  %2675 = vmatprep.mubr.msk.bf16.mxu0 %vm3143_vm0, %v3142_v0 }
 0x2ca   :  { %2666 = vmatpush3.bf16.msra.mxu1 %v3225_v4 }
 0x2cb   :  { %2674 = vmatpush3.bf16.msra.mxu0 %v3278_v34  ;;  %2679 = vmatprep.subr.bf16.mxu1 %v3142_v0 }
 0x2cc   :  { %2687 = vmatprep.subr.bf16.mxu0 %v3142_v0 }
 0x2cd   :  { %2668 = vmatmul.mubr.msk.bf16.vlgmr.msra.gmra.mxu1 %vm59_vm1, %v2444_v46 }
 0x2ce   :  { %2680 = vmatpush3.bf16.msra.mxu1 %v3284_v35  ;;  %2683 = vmatprep.mubr.msk.bf16.mxu1 %vm3143_vm0, %v3142_v0 }
 0x2cf   :  { %2681 = vmatprep.subr.bf16.mxu1 %v3142_v0 }
 0x2d2   :  { %2682 = vmatpush3.bf16.msra.mxu1 %v3291_v36 }
 0x2d3   :  { %2695 = vmatprep.subr.bf16.mxu1 %v3142_v0 }
 0x385   :  { %v300_v47 = vpop.f32.mrf.mxu1  ;;  %v371_v49 = vpop.f32.mrf.mxu0 }
 0x386   :  { %v301_v50 = vadd.f32 %v300_v47, %v242_v41  ;;  %v2449_v41 = vld [vmem:[%s3901_s0 + $0x2] sm:$0x1] }
 0x387   :  { %v2653_v51 = vpop.f32.mrf.mxu1  ;;  %v2661_v52 = vpop.f32.mrf.mxu0 }
 0x388   :  { %v313_v53 = vadd.f32 %v3333_v48, %v301_v50 }
 0x389   :  { %v303_v54 = vpop.f32.mrf.mxu1  ;;  %v374_v55 = vpop.f32.mrf.mxu0 }
 0x38a   :  { %v314_v56 = vmul.f32 %v313_v53, %v3255_v16 }
 0x38b   :  { %v2654_v57 = vpop.f32.mrf.mxu1  ;;  %v2662_v58 = vpop.f32.mrf.mxu0 }
 0x38c   :  { %3004 = vtanh.f32 %v314_v56 }
 0x38d   :  { %v414_v59 = vpop.f32.mrf.mxu1 }
 0x38e   :  { %v415_v60 = vadd.f32 %v414_v59, %v371_v49 }
 0x38f   :  { %v2669_v61 = vpop.f32.mrf.mxu1 }
 0x390   :  { %v420_v62 = vadd.f32 %v3251_v12, %v415_v60 }
 0x391   :  { %v417_v63 = vpop.f32.mrf.mxu1 }
 0x392   :  { %v421_v5 = vmul.f32 %v420_v62, %v3255_v16 }
 0x393   :  { %v2670_v6 = vpop.f32.mrf.mxu1 }
 0x394   :  { %3006 = vtanh.f32 %v421_v5 }
 0x399   :  { %v3005_v7 = vpop.eup %3004 }
 0x39a   :  { %v316_v9 = vmul.f32 %v3005_v7, %v3255_v16 }
 0x39c   :  { %v317_v10 = vadd.f32 %v316_v9, %v3261_v25 }
 0x39e   :  { %320 = vrot.lane.b32.xlu0 %v317_v10, %s3146_s17  ;;  %v318_v20 = vmul.f32 0.0, %v317_v10 }
 0x3a1   :  { %v3007_v11 = vpop.eup %3006 }
 0x3a2   :  { %v423_v13 = vmul.f32 %v3007_v11, %v3255_v16 }
 0x3a4   :  { %v424_v14 = vadd.f32 %v423_v13, %v3261_v25 }
 0x3a6   :  { %427 = vrot.lane.b32.xlu1 %v424_v14, %s3146_s17  ;;  %v425_v23 = vmul.f32 %v424_v14, %v3267_v32 }
 0x410   :  { %v321_v15 = vpop.permute.xlu0 %320 }
 0x411   :  { %v323_v17 = vmul.f32 %v321_v15, %v317_v10 }
 0x413   :  { %325 = vrot.lane.b32.xlu0 %v323_v17, %s3147_s18 }
 0x418   :  { %v428_v18 = vpop.permute.xlu1 %427 }
 0x419   :  { %v430_v19 = vmul.f32 %v428_v18, %v424_v14 }
 0x41b   :  { %432 = vrot.lane.b32.xlu1 %v430_v19, %s3147_s18 }
 0x485   :  { %v326_v21 = vpop.permute.xlu0 %325 }
 0x486   :  { %v3347_v22 = vadd.f32 %v326_v21, %v318_v20 }
 0x488   :  { %3008 = vtanh.f32 %v3347_v22 }
 0x48d   :  { %v433_v24 = vpop.permute.xlu1 %432 }
 0x48e   :  { %v3351_v26 = vadd.f32 %v433_v24, %v425_v23 }
 0x490   :  { %3010 = vtanh.f32 %v3351_v26 }
 0x495   :  { %v3009_v27 = vpop.eup %3008 }
 0x496   :  { %331 = vrot.lane.b32.xlu0 %v3009_v27, %s3146_s17 }
 0x49d   :  { %v3011_v28 = vpop.eup %3010 }
 0x49e   :  { %438 = vrot.lane.b32.xlu1 %v3011_v28, %s3146_s17 }
 0x508   :  { %v332_v29 = vpop.permute.xlu0 %331 }
 0x509   :  { %v334_v30 = vmul.f32 %v332_v29, %v317_v10 }
 0x50b   :  { %v443_v31 = vpack.c.bf16 %v334_v30, %v334_v30 }
 0x50d   :  { %445 = vrot.lane.b32.xlu0 %v443_v31, %s3147_s18 }
 0x510   :  { %v439_v37 = vpop.permute.xlu1 %438 }
 0x511   :  { %v441_v38 = vmul.f32 %v439_v37, %v424_v14 }
 0x513   :  { %v442_v39 = vpack.c.bf16 %v441_v38, %v441_v38 }
 0x515   :  { %491 = vrot.lane.b32.xlu1 %v442_v39, %s3147_s18 }
 0x57f   :  { %v446_v32 = vpop.permute.xlu0 %445 }
 0x580   :  { %2676 = vmatmul.mubr.msk.bf16.vlgmr.msra.gmra.mxu0 %vm59_vm1, %v446_v32 }
 0x581   :  { %2688 = vmatpush3.bf16.msra.mxu0 %v3203_v1  ;;  %2691 = vmatprep.mubr.msk.bf16.mxu0 %vm3143_vm0, %v3142_v0 }
 0x582   :  { %2689 = vmatprep.subr.bf16.mxu0 %v3142_v0 }
 0x585   :  { %2690 = vmatpush3.bf16.msra.mxu0 %v3218_v3 }
 0x586   :  { %2703 = vmatprep.subr.bf16.mxu0 %v3142_v0 }
 0x587   :  { %v492_v40 = vpop.permute.xlu1 %491 }
 0x588   :  { %2684 = vmatmul.mubr.msk.bf16.vlgmr.msra.gmra.mxu1 %vm59_vm1, %v492_v40  ;;  %2692 = vmatmul.mubr.msk.bf16.vlgmr.msra.gmra.mxu0 %vm59_vm1, %v492_v40  ;;  %v2454_v40 = vld [vmem:[%s3901_s0 + $0x3] sm:$0x1] }
 0x589   :  { %2696 = vmatpush3.bf16.msra.mxu1 %v3208_v2  ;;  %2699 = vmatprep.mubr.msk.bf16.mxu1 %vm3143_vm0, %v3142_v0 }
 0x58a   :  { %2697 = vmatprep.subr.bf16.mxu1 %v3142_v0  ;;  %2704 = vmatpush3.bf16.msra.mxu0 %v3273_v33 }
 0x58b   :  { %2705 = vmatprep.subr.bf16.mxu0 %v3142_v0  ;;  %2707 = vmatprep.mubr.msk.bf16.mxu0 %vm3143_vm0, %v3142_v0 }
 0x58d   :  { %2698 = vmatpush3.bf16.msra.mxu1 %v3225_v4 }
 0x58e   :  { %2706 = vmatpush3.bf16.msra.mxu0 %v3278_v34  ;;  %2711 = vmatprep.subr.bf16.mxu1 %v3142_v0 }
 0x58f   :  { %2719 = vmatprep.subr.bf16.mxu0 %v3142_v0 }
 0x590   :  { %2700 = vmatmul.mubr.msk.bf16.vlgmr.msra.gmra.mxu1 %vm59_vm1, %v2449_v41 }
 0x591   :  { %2712 = vmatpush3.bf16.msra.mxu1 %v3284_v35  ;;  %2715 = vmatprep.mubr.msk.bf16.mxu1 %vm3143_vm0, %v3142_v0 }
 0x592   :  { %2713 = vmatprep.subr.bf16.mxu1 %v3142_v0 }
 0x595   :  { %2714 = vmatpush3.bf16.msra.mxu1 %v3291_v36 }
 0x596   :  { %2727 = vmatprep.subr.bf16.mxu1 %v3142_v0 }
 0x640   :  { %v484_v42 = vpop.f32.mrf.mxu0 }
 0x642   :  { %v2677_v43 = vpop.f32.mrf.mxu0 }
 0x644   :  { %v487_v44 = vpop.f32.mrf.mxu0 }
 0x646   :  { %v2678_v45 = vpop.f32.mrf.mxu0 }
 0x648   :  { %v530_v46 = vpop.f32.mrf.mxu1  ;;  %v594_v47 = vpop.f32.mrf.mxu0 }
 0x649   :  { %v531_v49 = vadd.f32 %v530_v46, %v484_v42 }
 0x64a   :  { %v2685_v50 = vpop.f32.mrf.mxu1  ;;  %v2693_v51 = vpop.f32.mrf.mxu0 }
 0x64b   :  { %v536_v52 = vadd.f32 %v3333_v48, %v531_v49 }
 0x64c   :  { %v533_v53 = vpop.f32.mrf.mxu1  ;;  %v597_v54 = vpop.f32.mrf.mxu0 }
 0x64d   :  { %v537_v55 = vmul.f32 %v536_v52, %v3255_v16 }
 0x64e   :  { %v2686_v56 = vpop.f32.mrf.mxu1  ;;  %v2694_v57 = vpop.f32.mrf.mxu0 }
 0x64f   :  { %3012 = vtanh.f32 %v537_v55 }
 0x650   :  { %v637_v58 = vpop.f32.mrf.mxu1 }
 0x651   :  { %v638_v59 = vadd.f32 %v637_v58, %v594_v47 }
 0x652   :  { %v2701_v60 = vpop.f32.mrf.mxu1 }
 0x653   :  { %v643_v61 = vadd.f32 %v3251_v12, %v638_v59 }
 0x654   :  { %v640_v62 = vpop.f32.mrf.mxu1 }
 0x655   :  { %v644_v63 = vmul.f32 %v643_v61, %v3255_v16 }
 0x656   :  { %v2702_v5 = vpop.f32.mrf.mxu1 }
 0x657   :  { %3014 = vtanh.f32 %v644_v63 }
 0x65c   :  { %v3013_v6 = vpop.eup %3012 }
 0x65d   :  { %v539_v7 = vmul.f32 %v3013_v6, %v3255_v16 }
 0x65f   :  { %v540_v9 = vadd.f32 %v539_v7, %v3261_v25 }
 0x661   :  { %543 = vrot.lane.b32.xlu0 %v540_v9, %s3146_s17  ;;  %v541_v19 = vmul.f32 %v540_v9, %v3347_v22 }
 0x664   :  { %v3015_v10 = vpop.eup %3014 }
 0x665   :  { %v646_v11 = vmul.f32 %v3015_v10, %v3255_v16 }
 0x667   :  { %v647_v13 = vadd.f32 %v646_v11, %v3261_v25 }
 0x669   :  { %650 = vrot.lane.b32.xlu1 %v647_v13, %s3146_s17  ;;  %v648_v23 = vmul.f32 %v647_v13, %v3351_v26 }
 0x6d3   :  { %v544_v14 = vpop.permute.xlu0 %543 }
 0x6d4   :  { %v546_v15 = vmul.f32 %v544_v14, %v540_v9 }
 0x6d6   :  { %548 = vrot.lane.b32.xlu0 %v546_v15, %s3147_s18 }
 0x6db   :  { %v651_v17 = vpop.permute.xlu1 %650 }
 0x6dc   :  { %v653_v18 = vmul.f32 %v651_v17, %v647_v13 }
 0x6de   :  { %655 = vrot.lane.b32.xlu1 %v653_v18, %s3147_s18 }
 0x748   :  { %v549_v20 = vpop.permute.xlu0 %548 }
 0x749   :  { %v3402_v21 = vadd.f32 %v549_v20, %v541_v19 }
 0x74b   :  { %3016 = vtanh.f32 %v3402_v21 }
 0x750   :  { %v656_v24 = vpop.permute.xlu1 %655 }
 0x751   :  { %v3406_v27 = vadd.f32 %v656_v24, %v648_v23 }
 0x753   :  { %3018 = vtanh.f32 %v3406_v27 }
 0x758   :  { %v3017_v28 = vpop.eup %3016 }
 0x759   :  { %554 = vrot.lane.b32.xlu0 %v3017_v28, %s3146_s17 }
 0x760   :  { %v3019_v29 = vpop.eup %3018 }
 0x761   :  { %661 = vrot.lane.b32.xlu1 %v3019_v29, %s3146_s17 }
 0x7cb   :  { %v555_v30 = vpop.permute.xlu0 %554 }
 0x7cc   :  { %v557_v22 = vmul.f32 %v555_v30, %v540_v9 }
 0x7ce   :  { %v666_v31 = vpack.c.bf16 %v557_v22, %v557_v22 }
 0x7d0   :  { %668 = vrot.lane.b32.xlu0 %v666_v31, %s3147_s18 }
 0x7d3   :  { %v662_v37 = vpop.permute.xlu1 %661 }
 0x7d4   :  { %v664_v38 = vmul.f32 %v662_v37, %v647_v13 }
 0x7d6   :  { %v665_v39 = vpack.c.bf16 %v664_v38, %v664_v38 }
 0x7d8   :  { %714 = vrot.lane.b32.xlu1 %v665_v39, %s3147_s18 }
 0x842   :  { %v669_v26 = vpop.permute.xlu0 %668 }
 0x843   :  { %2708 = vmatmul.mubr.msk.bf16.vlgmr.msra.gmra.mxu0 %vm59_vm1, %v669_v26 }
 0x844   :  { %2720 = vmatpush3.bf16.msra.mxu0 %v3203_v1  ;;  %2723 = vmatprep.mubr.msk.bf16.mxu0 %vm3143_vm0, %v3142_v0 }
 0x845   :  { %2721 = vmatprep.subr.bf16.mxu0 %v3142_v0 }
 0x848   :  { %2722 = vmatpush3.bf16.msra.mxu0 %v3218_v3 }
 0x849   :  { %2735 = vmatprep.subr.bf16.mxu0 %v3142_v0 }
 0x84a   :  { %v715_v32 = vpop.permute.xlu1 %714 }
 0x84b   :  { %2716 = vmatmul.mubr.msk.bf16.vlgmr.msra.gmra.mxu1 %vm59_vm1, %v715_v32  ;;  %2724 = vmatmul.mubr.msk.bf16.vlgmr.msra.gmra.mxu0 %vm59_vm1, %v715_v32  ;;  %v2459_v32 = vld [vmem:[%s3901_s0 + $0x4] sm:$0x1] }
 0x84c   :  { %2728 = vmatpush3.bf16.msra.mxu1 %v3208_v2  ;;  %2731 = vmatprep.mubr.msk.bf16.mxu1 %vm3143_vm0, %v3142_v0 }
 0x84d   :  { %2729 = vmatprep.subr.bf16.mxu1 %v3142_v0  ;;  %2736 = vmatpush3.bf16.msra.mxu0 %v3273_v33 }
 0x84e   :  { %2737 = vmatprep.subr.bf16.mxu0 %v3142_v0  ;;  %2739 = vmatprep.mubr.msk.bf16.mxu0 %vm3143_vm0, %v3142_v0 }
 0x850   :  { %2730 = vmatpush3.bf16.msra.mxu1 %v3225_v4 }
 0x851   :  { %2738 = vmatpush3.bf16.msra.mxu0 %v3278_v34  ;;  %2743 = vmatprep.subr.bf16.mxu1 %v3142_v0 }
 0x852   :  { %2751 = vmatprep.subr.bf16.mxu0 %v3142_v0 }
 0x853   :  { %2732 = vmatmul.mubr.msk.bf16.vlgmr.msra.gmra.mxu1 %vm59_vm1, %v2454_v40 }
 0x854   :  { %2744 = vmatpush3.bf16.msra.mxu1 %v3284_v35  ;;  %2747 = vmatprep.mubr.msk.bf16.mxu1 %vm3143_vm0, %v3142_v0 }
 0x855   :  { %2745 = vmatprep.subr.bf16.mxu1 %v3142_v0 }
 0x858   :  { %2746 = vmatpush3.bf16.msra.mxu1 %v3291_v36 }
 0x859   :  { %2759 = vmatprep.subr.bf16.mxu1 %v3142_v0 }
 0x903   :  { %v707_v41 = vpop.f32.mrf.mxu0 }
 0x905   :  { %v2709_v42 = vpop.f32.mrf.mxu0 }
 0x907   :  { %v710_v43 = vpop.f32.mrf.mxu0 }
 0x909   :  { %v2710_v44 = vpop.f32.mrf.mxu0 }
 0x90b   :  { %v753_v45 = vpop.f32.mrf.mxu1  ;;  %v817_v46 = vpop.f32.mrf.mxu0 }
 0x90c   :  { %v754_v47 = vadd.f32 %v753_v45, %v707_v41 }
 0x90d   :  { %v2717_v49 = vpop.f32.mrf.mxu1  ;;  %v2725_v50 = vpop.f32.mrf.mxu0 }
 0x90e   :  { %v759_v51 = vadd.f32 %v3333_v48, %v754_v47 }
 0x90f   :  { %v756_v52 = vpop.f32.mrf.mxu1  ;;  %v820_v53 = vpop.f32.mrf.mxu0 }
 0x910   :  { %v760_v54 = vmul.f32 %v759_v51, %v3255_v16 }
 0x911   :  { %v2718_v55 = vpop.f32.mrf.mxu1  ;;  %v2726_v56 = vpop.f32.mrf.mxu0 }
 0x912   :  { %3020 = vtanh.f32 %v760_v54 }
 0x913   :  { %v860_v57 = vpop.f32.mrf.mxu1 }
 0x914   :  { %v861_v58 = vadd.f32 %v860_v57, %v817_v46 }
 0x915   :  { %v2733_v59 = vpop.f32.mrf.mxu1 }
 0x916   :  { %v866_v60 = vadd.f32 %v3251_v12, %v861_v58 }
 0x917   :  { %v863_v61 = vpop.f32.mrf.mxu1 }
 0x918   :  { %v867_v62 = vmul.f32 %v866_v60, %v3255_v16 }
 0x919   :  { %v2734_v63 = vpop.f32.mrf.mxu1 }
 0x91a   :  { %3022 = vtanh.f32 %v867_v62 }
 0x91f   :  { %v3021_v5 = vpop.eup %3020 }
 0x920   :  { %v762_v6 = vmul.f32 %v3021_v5, %v3255_v16 }
 0x922   :  { %v763_v7 = vadd.f32 %v762_v6, %v3261_v25 }
 0x924   :  { %766 = vrot.lane.b32.xlu0 %v763_v7, %s3146_s17  ;;  %v764_v18 = vmul.f32 %v763_v7, %v3402_v21 }
 0x927   :  { %v3023_v9 = vpop.eup %3022 }
 0x928   :  { %v869_v10 = vmul.f32 %v3023_v9, %v3255_v16 }
 0x92a   :  { %v870_v11 = vadd.f32 %v869_v10, %v3261_v25 }
 0x92c   :  { %873 = vrot.lane.b32.xlu1 %v870_v11, %s3146_s17  ;;  %v871_v23 = vmul.f32 %v870_v11, %v3406_v27 }
 0x996   :  { %v767_v13 = vpop.permute.xlu0 %766 }
 0x997   :  { %v769_v14 = vmul.f32 %v767_v13, %v763_v7 }
 0x999   :  { %771 = vrot.lane.b32.xlu0 %v769_v14, %s3147_s18 }
 0x99e   :  { %v874_v15 = vpop.permute.xlu1 %873 }
 0x99f   :  { %v876_v17 = vmul.f32 %v874_v15, %v870_v11 }
 0x9a1   :  { %878 = vrot.lane.b32.xlu1 %v876_v17, %s3147_s18 }
 0xa0b   :  { %v772_v19 = vpop.permute.xlu0 %771 }
 0xa0c   :  { %v3457_v20 = vadd.f32 %v772_v19, %v764_v18 }
 0xa0e   :  { %3024 = vtanh.f32 %v3457_v20 }
 0xa13   :  { %v879_v24 = vpop.permute.xlu1 %878 }
 0xa14   :  { %v3461_v28 = vadd.f32 %v879_v24, %v871_v23 }
 0xa16   :  { %3026 = vtanh.f32 %v3461_v28 }
 0xa1b   :  { %v3025_v29 = vpop.eup %3024 }
 0xa1c   :  { %777 = vrot.lane.b32.xlu0 %v3025_v29, %s3146_s17 }
 0xa23   :  { %v3027_v30 = vpop.eup %3026 }
 0xa24   :  { %884 = vrot.lane.b32.xlu1 %v3027_v30, %s3146_s17 }
 0xa8e   :  { %v778_v22 = vpop.permute.xlu0 %777 }
 0xa8f   :  { %v780_v21 = vmul.f32 %v778_v22, %v763_v7 }
 0xa91   :  { %v889_v31 = vpack.c.bf16 %v780_v21, %v780_v21 }
 0xa93   :  { %891 = vrot.lane.b32.xlu0 %v889_v31, %s3147_s18 }
 0xa96   :  { %v885_v37 = vpop.permute.xlu1 %884 }
 0xa97   :  { %v887_v38 = vmul.f32 %v885_v37, %v870_v11 }
 0xa99   :  { %v888_v39 = vpack.c.bf16 %v887_v38, %v887_v38 }
 0xa9b   :  { %937 = vrot.lane.b32.xlu1 %v888_v39, %s3147_s18 }
 0xb05   :  { %v892_v27 = vpop.permute.xlu0 %891 }
 0xb06   :  { %2740 = vmatmul.mubr.msk.bf16.vlgmr.msra.gmra.mxu0 %vm59_vm1, %v892_v27 }
 0xb07   :  { %2752 = vmatpush3.bf16.msra.mxu0 %v3203_v1  ;;  %2755 = vmatprep.mubr.msk.bf16.mxu0 %vm3143_vm0, %v3142_v0 }
 0xb08   :  { %2753 = vmatprep.subr.bf16.mxu0 %v3142_v0 }
 0xb0b   :  { %2754 = vmatpush3.bf16.msra.mxu0 %v3218_v3 }
 0xb0c   :  { %2767 = vmatprep.subr.bf16.mxu0 %v3142_v0 }
 0xb0d   :  { %v938_v26 = vpop.permute.xlu1 %937 }
 0xb0e   :  { %2748 = vmatmul.mubr.msk.bf16.vlgmr.msra.gmra.mxu1 %vm59_vm1, %v938_v26  ;;  %2756 = vmatmul.mubr.msk.bf16.vlgmr.msra.gmra.mxu0 %vm59_vm1, %v938_v26 }
 0xb0f   :  { %2760 = vmatpush3.bf16.msra.mxu1 %v3208_v2  ;;  %2763 = vmatprep.mubr.msk.bf16.mxu1 %vm3143_vm0, %v3142_v0 }
 0xb10   :  { %2761 = vmatprep.subr.bf16.mxu1 %v3142_v0  ;;  %2768 = vmatpush3.bf16.msra.mxu0 %v3273_v33 }
 0xb11   :  { %2769 = vmatprep.subr.bf16.mxu0 %v3142_v0  ;;  %2771 = vmatprep.mubr.msk.bf16.mxu0 %vm3143_vm0, %v3142_v0 }
 0xb13   :  { %2762 = vmatpush3.bf16.msra.mxu1 %v3225_v4 }
 0xb14   :  { %2770 = vmatpush3.bf16.msra.mxu0 %v3278_v34  ;;  %2775 = vmatprep.subr.bf16.mxu1 %v3142_v0 }
 0xb15   :  { %2783 = vmatprep.subr.bf16.mxu0 %v3142_v0 }
 0xb16   :  { %2764 = vmatmul.mubr.msk.bf16.vlgmr.msra.gmra.mxu1 %vm59_vm1, %v2459_v32 }
 0xb17   :  { %2776 = vmatpush3.bf16.msra.mxu1 %v3284_v35  ;;  %2779 = vmatprep.mubr.msk.bf16.mxu1 %vm3143_vm0, %v3142_v0 }
 0xb18   :  { %2777 = vmatprep.subr.bf16.mxu1 %v3142_v0 }
 0xb1b   :  { %2778 = vmatpush3.bf16.msra.mxu1 %v3291_v36 }
 0xb1c   :  { %2791 = vmatprep.subr.bf16.mxu1 %v3142_v0 }
 0xbc6   :  { %v930_v40 = vpop.f32.mrf.mxu0 }
 0xbc8   :  { %v2741_v41 = vpop.f32.mrf.mxu0 }
 0xbca   :  { %v933_v42 = vpop.f32.mrf.mxu0 }
 0xbcc   :  { %v2742_v43 = vpop.f32.mrf.mxu0 }
 0xbce   :  { %v976_v44 = vpop.f32.mrf.mxu1  ;;  %v1040_v45 = vpop.f32.mrf.mxu0 }
 0xbcf   :  { %v977_v46 = vadd.f32 %v976_v44, %v930_v40 }
 0xbd0   :  { %v2749_v47 = vpop.f32.mrf.mxu1  ;;  %v2757_v49 = vpop.f32.mrf.mxu0 }
 0xbd1   :  { %v982_v50 = vadd.f32 %v3333_v48, %v977_v46 }
 0xbd2   :  { %v979_v51 = vpop.f32.mrf.mxu1  ;;  %v1043_v52 = vpop.f32.mrf.mxu0 }
 0xbd3   :  { %v983_v53 = vmul.f32 %v982_v50, %v3255_v16 }
 0xbd4   :  { %v2750_v54 = vpop.f32.mrf.mxu1  ;;  %v2758_v55 = vpop.f32.mrf.mxu0 }
 0xbd5   :  { %3028 = vtanh.f32 %v983_v53 }
 0xbd6   :  { %v1083_v56 = vpop.f32.mrf.mxu1 }
 0xbd7   :  { %v1084_v57 = vadd.f32 %v1083_v56, %v1040_v45 }
 0xbd8   :  { %v2765_v58 = vpop.f32.mrf.mxu1 }
 0xbd9   :  { %v1089_v59 = vadd.f32 %v3251_v12, %v1084_v57 }
 0xbda   :  { %v1086_v60 = vpop.f32.mrf.mxu1 }
 0xbdb   :  { %v1090_v61 = vmul.f32 %v1089_v59, %v3255_v16 }
 0xbdc   :  { %v2766_v62 = vpop.f32.mrf.mxu1 }
 0xbdd   :  { %3030 = vtanh.f32 %v1090_v61 }
 0xbe2   :  { %v3029_v63 = vpop.eup %3028 }
 0xbe3   :  { %v985_v5 = vmul.f32 %v3029_v63, %v3255_v16 }
 0xbe5   :  { %v986_v6 = vadd.f32 %v985_v5, %v3261_v25 }
 0xbe7   :  { %989 = vrot.lane.b32.xlu0 %v986_v6, %s3146_s17  ;;  %v987_v17 = vmul.f32 %v986_v6, %v3457_v20 }
 0xbea   :  { %v3031_v7 = vpop.eup %3030 }
 0xbeb   :  { %v1092_v9 = vmul.f32 %v3031_v7, %v3255_v16 }
 0xbed   :  { %v1093_v10 = vadd.f32 %v1092_v9, %v3261_v25 }
 0xbef   :  { %1096 = vrot.lane.b32.xlu1 %v1093_v10, %s3146_s17  ;;  %v1094_v23 = vmul.f32 %v1093_v10, %v3461_v28 }
 0xc59   :  { %v990_v11 = vpop.permute.xlu0 %989 }
 0xc5a   :  { %v992_v13 = vmul.f32 %v990_v11, %v986_v6 }
 0xc5c   :  { %994 = vrot.lane.b32.xlu0 %v992_v13, %s3147_s18 }
 0xc61   :  { %v1097_v14 = vpop.permute.xlu1 %1096 }
 0xc62   :  { %v1099_v15 = vmul.f32 %v1097_v14, %v1093_v10 }
 0xc64   :  { %1101 = vrot.lane.b32.xlu1 %v1099_v15, %s3147_s18 }
 0xcce   :  { %v995_v18 = vpop.permute.xlu0 %994 }
 0xccf   :  { %v3512_v19 = vadd.f32 %v995_v18, %v987_v17 }
 0xcd1   :  { %3032 = vtanh.f32 %v3512_v19 }
 0xcd6   :  { %v1102_v24 = vpop.permute.xlu1 %1101 }
 0xcd7   :  { %v3516_v29 = vadd.f32 %v1102_v24, %v1094_v23 }
 0xcd9   :  { %3034 = vtanh.f32 %v3516_v29 }
 0xcde   :  { %v3033_v30 = vpop.eup %3032 }
 0xcdf   :  { %1000 = vrot.lane.b32.xlu0 %v3033_v30, %s3146_s17 }
 0xce6   :  { %v3035_v22 = vpop.eup %3034 }
 0xce7   :  { %1107 = vrot.lane.b32.xlu1 %v3035_v22, %s3146_s17 }
 0xd51   :  { %v1001_v21 = vpop.permute.xlu0 %1000 }
 0xd52   :  { %v1003_v20 = vmul.f32 %v1001_v21, %v986_v6 }
 0xd54   :  { %v1112_v31 = vpack.c.bf16 %v1003_v20, %v1003_v20  ;;  %v3582_v20 = vld [vmem:[%s3900_s1 + $0x18] sm:$0xff]  }
 0xd56   :  { %1114 = vrot.lane.b32.xlu0 %v1112_v31, %s3147_s18  ;;  %v3591_v31 = vld [vmem:[%s3900_s1 + $0x10] sm:$0xff]  }
 0xd59   :  { %v1108_v37 = vpop.permute.xlu1 %1107 }
 0xd5a   :  { %v1110_v38 = vmul.f32 %v1108_v37, %v1093_v10 }
 0xd5c   :  { %v1111_v39 = vpack.c.bf16 %v1110_v38, %v1110_v38  ;;  %v3600_v38 = vld [vmem:[%s3900_s1 + $0x8] sm:$0xff]  }
 0xd5e   :  { %1160 = vrot.lane.b32.xlu1 %v1111_v39, %s3147_s18  ;;  %v3613_v39 = vld [vmem:[%s3900_s1] sm:$0xff]  }
 0xdc8   :  { %v1115_v28 = vpop.permute.xlu0 %1114 }
 0xdc9   :  { %2772 = vmatmul.mubr.msk.bf16.vlgmr.msra.gmra.mxu0 %vm59_vm1, %v1115_v28  ;;  %v2469_v28 = vld [vmem:[%s3901_s0 + $0x6] sm:$0x1] }
 0xdca   :  { %2784 = vmatpush3.bf16.msra.mxu0 %v3203_v1  ;;  %2787 = vmatprep.mubr.msk.bf16.mxu0 %vm3143_vm0, %v3142_v0  ;;  %v2464_v1 = vld [vmem:[%s3901_s0 + $0x5] sm:$0x1] }
 0xdcb   :  { %2785 = vmatprep.subr.bf16.mxu0 %v3142_v0 }
 0xdce   :  { %2786 = vmatpush3.bf16.msra.mxu0 %v3218_v3 }
 0xdcf   :  { %2799 = vmatprep.subr.bf16.mxu0 %v3142_v0 }
 0xdd0   :  { %v1161_v27 = vpop.permute.xlu1 %1160 }
 0xdd1   :  { %2780 = vmatmul.mubr.msk.bf16.vlgmr.msra.gmra.mxu1 %vm59_vm1, %v1161_v27  ;;  %2788 = vmatmul.mubr.msk.bf16.vlgmr.msra.gmra.mxu0 %vm59_vm1, %v1161_v27 }
 0xdd2   :  { %2792 = vmatpush3.bf16.msra.mxu1 %v3208_v2  ;;  %2795 = vmatprep.mubr.msk.bf16.mxu1 %vm3143_vm0, %v3142_v0 }
 0xdd3   :  { %2793 = vmatprep.subr.bf16.mxu1 %v3142_v0  ;;  %2800 = vmatpush3.bf16.msra.mxu0 %v3273_v33 }
 0xdd4   :  { %2801 = vmatprep.subr.bf16.mxu0 %v3142_v0  ;;  %2803 = vmatprep.mubr.msk.bf16.mxu0 %vm3143_vm0, %v3142_v0 }
 0xdd6   :  { %2794 = vmatpush3.bf16.msra.mxu1 %v3225_v4 }
 0xdd7   :  { %2802 = vmatpush3.bf16.msra.mxu0 %v3278_v34  ;;  %2807 = vmatprep.subr.bf16.mxu1 %v3142_v0 }
 0xdd8   :  { %2815 = vmatprep.subr.bf16.mxu0 %v3142_v0 }
 0xdd9   :  { %2796 = vmatmul.mubr.msk.bf16.vlgmr.msra.gmra.mxu1 %vm59_vm1, %v2464_v1 }
 0xdda   :  { %2808 = vmatpush3.bf16.msra.mxu1 %v3284_v35  ;;  %2811 = vmatprep.mubr.msk.bf16.mxu1 %vm3143_vm0, %v3142_v0 }
 0xddb   :  { %2809 = vmatprep.subr.bf16.mxu1 %v3142_v0 }
 0xdde   :  { %2810 = vmatpush3.bf16.msra.mxu1 %v3291_v36 }
 0xddf   :  { %2823 = vmatprep.subr.bf16.mxu1 %v3142_v0 }
 0xe89   :  { %v1153_v2 = vpop.f32.mrf.mxu0 }
 0xe8b   :  { %v2773_v3 = vpop.f32.mrf.mxu0 }
 0xe8d   :  { %v1156_v4 = vpop.f32.mrf.mxu0 }
 0xe8f   :  { %v2774_v26 = vpop.f32.mrf.mxu0 }
 0xe91   :  { %v1199_v32 = vpop.f32.mrf.mxu1  ;;  %v1263_v40 = vpop.f32.mrf.mxu0 }
 0xe92   :  { %v1200_v41 = vadd.f32 %v1199_v32, %v1153_v2 }
 0xe93   :  { %v2781_v42 = vpop.f32.mrf.mxu1  ;;  %v2789_v43 = vpop.f32.mrf.mxu0 }
 0xe94   :  { %v1205_v44 = vadd.f32 %v3333_v48, %v1200_v41 }
 0xe95   :  { %v1202_v45 = vpop.f32.mrf.mxu1  ;;  %v1266_v46 = vpop.f32.mrf.mxu0 }
 0xe96   :  { %v1206_v47 = vmul.f32 %v1205_v44, %v3255_v16 }
 0xe97   :  { %v2782_v49 = vpop.f32.mrf.mxu1  ;;  %v2790_v50 = vpop.f32.mrf.mxu0 }
 0xe98   :  { %3036 = vtanh.f32 %v1206_v47  ;;  %v3634_v47 = vld [vmem:[%s3902_s4] ss:$0 sm:$0xff] }
 0xe99   :  { %v1306_v51 = vpop.f32.mrf.mxu1 }
 0xe9a   :  { %v1307_v52 = vadd.f32 %v1306_v51, %v1263_v40 }
 0xe9b   :  { %v2797_v53 = vpop.f32.mrf.mxu1 }
 0xe9c   :  { %v1312_v54 = vadd.f32 %v3251_v12, %v1307_v52 }
 0xe9d   :  { %v1309_v55 = vpop.f32.mrf.mxu1 }
 0xe9e   :  { %v1313_v56 = vmul.f32 %v1312_v54, %v3255_v16 }
 0xe9f   :  { %v2798_v57 = vpop.f32.mrf.mxu1 }
 0xea0   :  { %3038 = vtanh.f32 %v1313_v56 }
 0xea5   :  { %v3037_v58 = vpop.eup %3036 }
 0xea6   :  { %v1208_v59 = vmul.f32 %v3037_v58, %v3255_v16 }
 0xea8   :  { %v1209_v60 = vadd.f32 %v1208_v59, %v3261_v25 }
 0xeaa   :  { %1212 = vrot.lane.b32.xlu0 %v1209_v60, %s3146_s17  ;;  %v1210_v9 = vmul.f32 %v1209_v60, %v3512_v19 }
 0xead   :  { %v3039_v61 = vpop.eup %3038 }
 0xeae   :  { %v1315_v62 = vmul.f32 %v3039_v61, %v3255_v16 }
 0xeb0   :  { %v1316_v63 = vadd.f32 %v1315_v62, %v3261_v25 }
 0xeb2   :  { %1319 = vrot.lane.b32.xlu1 %v1316_v63, %s3146_s17  ;;  %v1317_v13 = vmul.f32 %v1316_v63, %v3516_v29 }
 0xf1c   :  { %v1213_v12 = vpop.permute.xlu0 %1212 }
 0xf1d   :  { %v1215_v5 = vmul.f32 %v1213_v12, %v1209_v60 }
 0xf1f   :  { %1217 = vrot.lane.b32.xlu0 %v1215_v5, %s3147_s18 }
 0xf24   :  { %v1320_v6 = vpop.permute.xlu1 %1319 }
 0xf25   :  { %v1322_v7 = vmul.f32 %v1320_v6, %v1316_v63 }
 0xf27   :  { %1324 = vrot.lane.b32.xlu1 %v1322_v7, %s3147_s18 }
 0xf91   :  { %v1218_v10 = vpop.permute.xlu0 %1217 }
 0xf92   :  { %v3567_v11 = vadd.f32 %v1218_v10, %v1210_v9 }
 0xf94   :  { %3040 = vtanh.f32 %v3567_v11 }
 0xf99   :  { %v1325_v14 = vpop.permute.xlu1 %1324 }
 0xf9a   :  { %v3571_v15 = vadd.f32 %v1325_v14, %v1317_v13 }
 0xf9c   :  { %3042 = vtanh.f32 %v3571_v15 }
 0xfa1   :  { %v3041_v17 = vpop.eup %3040 }
 0xfa2   :  { %1223 = vrot.lane.b32.xlu0 %v3041_v17, %s3146_s17 }
 0xfa9   :  { %v3043_v18 = vpop.eup %3042 }
 0xfaa   :  { %1330 = vrot.lane.b32.xlu1 %v3043_v18, %s3146_s17 }
0x1014   :  { %v1224_v23 = vpop.permute.xlu0 %1223 }
0x1015   :  { %v1226_v19 = vmul.f32 %v1224_v23, %v1209_v60 }
0x1017   :  { %v1335_v24 = vpack.c.bf16 %v1226_v19, %v1226_v19 }
0x1019   :  { %1337 = vrot.lane.b32.xlu0 %v1335_v24, %s3147_s18  ;;  %v3069_v24 = vld [vmem:[%s3903_s2 + $0x18] sm:$0xff]  }
0x101c   :  { %v1331_v30 = vpop.permute.xlu1 %1330 }
0x101d   :  { %v1333_v22 = vmul.f32 %v1331_v30, %v1316_v63  ;;  %v2474_v30 = vld [vmem:[%s3901_s0 + $0x7] sm:$0x1] }
0x101f   :  { %v1334_v21 = vpack.c.bf16 %v1333_v22, %v1333_v22  ;;  %v3070_v22 = vld [vmem:[%s3903_s2 + $0x10] sm:$0xff]  }
0x1021   :  { %1383 = vrot.lane.b32.xlu1 %v1334_v21, %s3147_s18  ;;  %v3071_v21 = vld [vmem:[%s3903_s2 + $0x8] sm:$0xff]  }
0x108b   :  { %v1338_v29 = vpop.permute.xlu0 %1337 }
0x108c   :  { %2804 = vmatmul.mubr.msk.bf16.vlgmr.msra.gmra.mxu0 %vm59_vm1, %v1338_v29  ;;  %v3072_v29 = vld [vmem:[%s3903_s2] sm:$0xff]  }
0x108d   :  { %2816 = vmatpush3.bf16.msra.mxu0 %v3582_v20  ;;  %2819 = vmatprep.mubr.msk.bf16.mxu0 %vm3143_vm0, %v3142_v0 }
0x108e   :  { %2817 = vmatprep.subr.bf16.mxu0 %v3142_v0 }
0x1091   :  { %2818 = vmatpush3.bf16.msra.mxu0 %v3591_v31 }
0x1092   :  { %2831 = vmatprep.subr.bf16.mxu0 %v3142_v0 }
0x1093   :  { %v1384_v37 = vpop.permute.xlu1 %1383 }
0x1094   :  { %2812 = vmatmul.mubr.msk.bf16.vlgmr.msra.gmra.mxu1 %vm59_vm1, %v1384_v37  ;;  %2820 = vmatmul.mubr.msk.bf16.vlgmr.msra.gmra.mxu0 %vm59_vm1, %v1384_v37 }
0x1095   :  { %2824 = vmatpush3.bf16.msra.mxu1 %v3600_v38  ;;  %2827 = vmatprep.mubr.msk.bf16.mxu1 %vm3143_vm0, %v3142_v0 }
0x1096   :  { %2825 = vmatprep.subr.bf16.mxu1 %v3142_v0  ;;  %2832 = vmatpush3.bf16.msra.mxu0 %v3273_v33 }
0x1097   :  { %2833 = vmatprep.subr.bf16.mxu0 %v3142_v0  ;;  %2835 = vmatprep.mubr.msk.bf16.mxu0 %vm3143_vm0, %v3142_v0 }
0x1099   :  { %2826 = vmatpush3.bf16.msra.mxu1 %v3613_v39 }
0x109a   :  { %2834 = vmatpush3.bf16.msra.mxu0 %v3278_v34  ;;  %2839 = vmatprep.subr.bf16.mxu1 %v3142_v0 }
0x109b   :  { %2847 = vmatprep.subr.bf16.mxu0 %v3142_v0 }
0x109c   :  { %2828 = vmatmul.mubr.msk.bf16.vlgmr.msra.gmra.mxu1 %vm59_vm1, %v2469_v28 }
0x109d   :  { %2840 = vmatpush3.bf16.msra.mxu1 %v3284_v35  ;;  %2843 = vmatprep.mubr.msk.bf16.mxu1 %vm3143_vm0, %v3142_v0 }
0x109e   :  { %2841 = vmatprep.subr.bf16.mxu1 %v3142_v0 }
0x10a1   :  { %2842 = vmatpush3.bf16.msra.mxu1 %v3291_v36 }
0x10a2   :  { %2855 = vmatprep.subr.bf16.mxu1 %v3142_v0 }
0x114c   :  { %v1376_v33 = vpop.f32.mrf.mxu0 }
0x114e   :  { %v2805_v27 = vpop.f32.mrf.mxu0 }
0x1150   :  { %v1379_v34 = vpop.f32.mrf.mxu0 }
0x1152   :  { %v2806_v1 = vpop.f32.mrf.mxu0 }
0x1153   :  { %v3073_v1 = vld [vmem:[%s3904_s5] ss:$0 sm:$0xff] }
0x1154   :  { %v1422_v2 = vpop.f32.mrf.mxu1  ;;  %v1486_v3 = vpop.f32.mrf.mxu0 }
0x1155   :  { %v1423_v4 = vadd.f32 %v1422_v2, %v1376_v33 }
0x1156   :  { %v2813_v26 = vpop.f32.mrf.mxu1  ;;  %v2821_v32 = vpop.f32.mrf.mxu0 }
0x1157   :  { %v1428_v35 = vadd.f32 %v3333_v48, %v1423_v4 }
0x1158   :  { %v1425_v40 = vpop.f32.mrf.mxu1  ;;  %v1489_v41 = vpop.f32.mrf.mxu0 }
0x1159   :  { %v1429_v42 = vmul.f32 %v1428_v35, %v3255_v16 }
0x115a   :  { %v2814_v43 = vpop.f32.mrf.mxu1  ;;  %v2822_v44 = vpop.f32.mrf.mxu0 }
0x115b   :  { %3044 = vtanh.f32 %v1429_v42 }
0x115c   :  { %v1529_v36 = vpop.f32.mrf.mxu1 }
0x115d   :  { %v1530_v45 = vadd.f32 %v1529_v36, %v1486_v3 }
0x115e   :  { %v2829_v46 = vpop.f32.mrf.mxu1 }
0x115f   :  { %v1535_v49 = vadd.f32 %v3634_v47, %v1530_v45 }
0x1160   :  { %v1532_v50 = vpop.f32.mrf.mxu1 }
0x1161   :  { %v1536_v48 = vmul.f32 %v1535_v49, %v3255_v16 }
0x1162   :  { %v2830_v51 = vpop.f32.mrf.mxu1 }
0x1163   :  { %3046 = vtanh.f32 %v1536_v48 }
0x1168   :  { %v3045_v52 = vpop.eup %3044 }
0x1169   :  { %v1431_v53 = vmul.f32 %v3045_v52, %v3255_v16 }
0x116b   :  { %v1432_v54 = vadd.f32 %v1431_v53, %v3261_v25 }
0x116d   :  { %1435 = vrot.lane.b32.xlu0 %v1432_v54, %s3146_s17  ;;  %v1433_v62 = vmul.f32 %v1432_v54, %v3567_v11 }
0x1170   :  { %v3047_v55 = vpop.eup %3046 }
0x1171   :  { %v1538_v56 = vmul.f32 %v3047_v55, %v3255_v16 }
0x1173   :  { %v1539_v57 = vadd.f32 %v1538_v56, %v3261_v25 }
0x1175   :  { %1542 = vrot.lane.b32.xlu1 %v1539_v57, %s3146_s17  ;;  %v1540_v5 = vmul.f32 %v1539_v57, %v3571_v15 }
0x11df   :  { %v1436_v58 = vpop.permute.xlu0 %1435 }
0x11e0   :  { %v1438_v59 = vmul.f32 %v1436_v58, %v1432_v54 }
0x11e2   :  { %1440 = vrot.lane.b32.xlu0 %v1438_v59, %s3147_s18 }
0x11e7   :  { %v1543_v60 = vpop.permute.xlu1 %1542 }
0x11e8   :  { %v1545_v61 = vmul.f32 %v1543_v60, %v1539_v57 }
0x11ea   :  { %1547 = vrot.lane.b32.xlu1 %v1545_v61, %s3147_s18 }
0x1254   :  { %v1441_v63 = vpop.permute.xlu0 %1440 }
0x1255   :  { %v3647_v12 = vadd.f32 %v1441_v63, %v1433_v62 }
0x1257   :  { %3048 = vtanh.f32 %v3647_v12 }
0x125c   :  { %v1548_v6 = vpop.permute.xlu1 %1547 }
0x125d   :  { %v3651_v7 = vadd.f32 %v1548_v6, %v1540_v5 }
0x125f   :  { %3050 = vtanh.f32 %v3651_v7 }
0x1264   :  { %v3049_v9 = vpop.eup %3048 }
0x1265   :  { %1446 = vrot.lane.b32.xlu0 %v3049_v9, %s3146_s17 }
0x126c   :  { %v3051_v10 = vpop.eup %3050 }
0x126d   :  { %1553 = vrot.lane.b32.xlu1 %v3051_v10, %s3146_s17 }
0x12d7   :  { %v1447_v13 = vpop.permute.xlu0 %1446 }
0x12d8   :  { %v1449_v11 = vmul.f32 %v1447_v13, %v1432_v54 }
0x12da   :  { %v1558_v14 = vpack.c.bf16 %v1449_v11, %v1449_v11 }
0x12dc   :  { %1560 = vrot.lane.b32.xlu0 %v1558_v14, %s3147_s18 }
0x12df   :  { %v1554_v17 = vpop.permute.xlu1 %1553 }
0x12e0   :  { %v1556_v18 = vmul.f32 %v1554_v17, %v1539_v57 }
0x12e2   :  { %v1557_v23 = vpack.c.bf16 %v1556_v18, %v1556_v18 }
0x12e4   :  { %1606 = vrot.lane.b32.xlu1 %v1557_v23, %s3147_s18 }
0x134e   :  { %v1561_v15 = vpop.permute.xlu0 %1560 }
0x134f   :  { %2836 = vmatmul.mubr.msk.bf16.vlgmr.msra.gmra.mxu0 %vm59_vm1, %v1561_v15 }
0x1350   :  { %2848 = vmatpush3.bf16.msra.mxu0 %v3582_v20  ;;  %2851 = vmatprep.mubr.msk.bf16.mxu0 %vm3143_vm0, %v3142_v0 }
0x1351   :  { %2849 = vmatprep.subr.bf16.mxu0 %v3142_v0 }
0x1354   :  { %2850 = vmatpush3.bf16.msra.mxu0 %v3591_v31 }
0x1355   :  { %2863 = vmatprep.subr.bf16.mxu0 %v3142_v0 }
0x1356   :  { %v1607_v19 = vpop.permute.xlu1 %1606 }
0x1357   :  { %2844 = vmatmul.mubr.msk.bf16.vlgmr.msra.gmra.mxu1 %vm59_vm1, %v1607_v19  ;;  %2852 = vmatmul.mubr.msk.bf16.vlgmr.msra.gmra.mxu0 %vm59_vm1, %v1607_v19 }
0x1358   :  { %2856 = vmatpush3.bf16.msra.mxu1 %v3600_v38  ;;  %2859 = vmatprep.mubr.msk.bf16.mxu1 %vm3143_vm0, %v3142_v0 }
0x1359   :  { %2857 = vmatprep.subr.bf16.mxu1 %v3142_v0  ;;  %2864 = vmatpush3.bf16.msra.mxu0 %v3069_v24 }
0x135a   :  { %2865 = vmatprep.subr.bf16.mxu0 %v3142_v0  ;;  %2867 = vmatprep.mubr.msk.bf16.mxu0 %vm3143_vm0, %v3142_v0 }
0x135c   :  { %2858 = vmatpush3.bf16.msra.mxu1 %v3613_v39 }
0x135d   :  { %2866 = vmatpush3.bf16.msra.mxu0 %v3070_v22  ;;  %2871 = vmatprep.subr.bf16.mxu1 %v3142_v0 }
0x135e   :  { %2879 = vmatprep.subr.bf16.mxu0 %v3142_v0 }
0x135f   :  { %2860 = vmatmul.mubr.msk.bf16.vlgmr.msra.gmra.mxu1 %vm59_vm1, %v2474_v30 }
0x1360   :  { %2872 = vmatpush3.bf16.msra.mxu1 %v3071_v21  ;;  %2875 = vmatprep.mubr.msk.bf16.mxu1 %vm3143_vm0, %v3142_v0 }
0x1361   :  { %2873 = vmatprep.subr.bf16.mxu1 %v3142_v0 }
0x1364   :  { %2874 = vmatpush3.bf16.msra.mxu1 %v3072_v29 }
0x140f   :  { %v1599_v20 = vpop.f32.mrf.mxu0 }
0x1411   :  { %v2837_v31 = vpop.f32.mrf.mxu0 }
0x1413   :  { %v1602_v37 = vpop.f32.mrf.mxu0 }
0x1415   :  { %v2838_v38 = vpop.f32.mrf.mxu0 }
0x1417   :  { %v1645_v39 = vpop.f32.mrf.mxu1  ;;  %v1709_v28 = vpop.f32.mrf.mxu0 }
0x1418   :  { %v1646_v33 = vadd.f32 %v1645_v39, %v1599_v20 }
0x1419   :  { %v2845_v27 = vpop.f32.mrf.mxu1  ;;  %v2853_v34 = vpop.f32.mrf.mxu0 }
0x141a   :  { %v1651_v2 = vadd.f32 %v3073_v1, %v1646_v33  ;;  %v2998_v34 = vld [vmem:[%s3905_s6 + $0x8] sm:$0xff]  }
0x141b   :  { %v1648_v3 = vpop.f32.mrf.mxu1  ;;  %v1712_v4 = vpop.f32.mrf.mxu0 }
0x141c   :  { %v1652_v26 = vmul.f32 %v1651_v2, %v3255_v16 }
0x141d   :  { %v2846_v32 = vpop.f32.mrf.mxu1  ;;  %v2854_v35 = vpop.f32.mrf.mxu0 }
0x141e   :  { %3052 = vtanh.f32 %v1652_v26  ;;  %v3742_v35 = vcvt.s32.f32 %v3240_v8  ;;  %v2479_v8 = vld [vmem:[%s3906_s7] ss:$0 sm:$0xff] }
0x141f   :  { %v1752_v40 = vpop.f32.mrf.mxu1 }
0x1420   :  { %v1753_v41 = vadd.f32 %v1752_v40, %v1709_v28 }
0x1421   :  { %v2861_v42 = vpop.f32.mrf.mxu1 }
0x1422   :  { %v1758_v43 = vadd.f32 %v3634_v47, %v1753_v41 }
0x1423   :  { %v1755_v44 = vpop.f32.mrf.mxu1 }
0x1424   :  { %v1759_v36 = vmul.f32 %v1758_v43, %v3255_v16 }
0x1425   :  { %v2862_v45 = vpop.f32.mrf.mxu1 }
0x1426   :  { %3054 = vtanh.f32 %v1759_v36 }
0x142b   :  { %v3053_v46 = vpop.eup %3052 }
0x142c   :  { %v1654_v49 = vmul.f32 %v3053_v46, %v3255_v16 }
0x142e   :  { %v1655_v50 = vadd.f32 %v1654_v49, %v3261_v25 }
0x1430   :  { %1658 = vrot.lane.b32.xlu0 %v1655_v50, %s3146_s17  ;;  %v1656_v56 = vmul.f32 %v1655_v50, %v3647_v12 }
0x1433   :  { %v3055_v48 = vpop.eup %3054 }
0x1434   :  { %v1761_v51 = vmul.f32 %v3055_v48, %v3255_v16 }
0x1436   :  { %v1762_v52 = vadd.f32 %v1761_v51, %v3261_v25 }
0x1438   :  { %1765 = vrot.lane.b32.xlu1 %v1762_v52, %s3146_s17  ;;  %v1763_v59 = vmul.f32 %v1762_v52, %v3651_v7 }
0x14a2   :  { %v1659_v47 = vpop.permute.xlu0 %1658 }
0x14a3   :  { %v1661_v53 = vmul.f32 %v1659_v47, %v1655_v50 }
0x14a5   :  { %1663 = vrot.lane.b32.xlu0 %v1661_v53, %s3147_s18 }
0x14aa   :  { %v1766_v54 = vpop.permute.xlu1 %1765 }
0x14ab   :  { %v1768_v55 = vmul.f32 %v1766_v54, %v1762_v52 }
0x14ad   :  { %1770 = vrot.lane.b32.xlu1 %v1768_v55, %s3147_s18 }
0x1517   :  { %v1664_v57 = vpop.permute.xlu0 %1663 }
0x1518   :  { %v1666_v58 = vadd.f32 %v1664_v57, %v1656_v56 }
0x151a   :  { %3056 = vtanh.f32 %v1666_v58 }
0x151f   :  { %v1771_v60 = vpop.permute.xlu1 %1770 }
0x1520   :  { %v3712_v61 = vadd.f32 %v1771_v60, %v1763_v59  }
0x1522   :  { %3058 = vtanh.f32 %v3712_v61 }
0x1527   :  { %v3057_v62 = vpop.eup %3056 }
0x1528   :  { %1669 = vrot.lane.b32.xlu0 %v3057_v62, %s3146_s17 }
0x152f   :  { %v3059_v63 = vpop.eup %3058 }
0x1530   :  { %1776 = vrot.lane.b32.xlu1 %v3059_v63, %s3146_s17 }
0x159a   :  { %v1670_v5 = vpop.permute.xlu0 %1669 }
0x159b   :  { %v1672_v6 = vmul.f32 %v1670_v5, %v1655_v50 }
0x159d   :  { %v1781_v9 = vpack.c.bf16 %v1672_v6, %v1672_v6 }
0x159f   :  { %1783 = vrot.lane.b32.xlu0 %v1781_v9, %s3147_s18 }
0x15a2   :  { %v1777_v12 = vpop.permute.xlu1 %1776 }
0x15a3   :  { %v3718_v10 = vmul.f32 %v1777_v12, %v1762_v52  }
0x15a5   :  { %v1780_v7 = vpack.c.bf16 %v3718_v10, %v3718_v10 }
0x15a7   :  { %1829 = vrot.lane.b32.xlu1 %v1780_v7, %s3147_s18 }
0x1611   :  { %v1784_v13 = vpop.permute.xlu0 %1783 }
0x1612   :  { %2868 = vmatmul.mubr.msk.bf16.vlgmr.msra.gmra.mxu0 %vm59_vm1, %v1784_v13 }
0x1613   :  { %2883 = vmatprep.mubr.msk.bf16.mxu0 %vm3143_vm0, %v3142_v0  ;;  %2880 = vmatpush3.bf16.msra.mxu0 %v2998_v34 }
0x1614   :  { %2881 = vmatprep.subr.bf16.mxu0 %v3142_v0 }
0x1619   :  { %v1830_v11 = vpop.permute.xlu1 %1829 }
0x161a   :  { %2876 = vmatmul.mubr.msk.bf16.vlgmr.msra.gmra.mxu1 %vm59_vm1, %v1830_v11 }
0x16d2   :  { %v1822_v14 = vpop.f32.mrf.mxu0 }
0x16d4   :  { %v2869_v17 = vpop.f32.mrf.mxu0 }
0x16d6   :  { %v1825_v18 = vpop.f32.mrf.mxu0 }
0x16d8   :  { %v2870_v23 = vpop.f32.mrf.mxu0 }
0x16da   :  { %v1868_v15 = vpop.f32.mrf.mxu1 }
0x16db   :  { %v1869_v19 = vadd.f32 %v1868_v15, %v1822_v14 }
0x16dc   :  { %v2877_v24 = vpop.f32.mrf.mxu1 }
0x16dd   :  { %v1874_v30 = vadd.f32 %v3073_v1, %v1869_v19  ;;  %v2999_v1 = vld [vmem:[%s3905_s6] sm:$0xff]  }
0x16de   :  { %v1871_v22 = vpop.f32.mrf.mxu1  ;;  %2882 = vmatpush3.bf16.msra.mxu0 %v2999_v1 }
0x16df   :  { %v1875_v21 = vmul.f32 %v1874_v30, %v3255_v16 }
0x16e0   :  { %v2878_v29 = vpop.f32.mrf.mxu1 }
0x16e1   :  { %3060 = vtanh.f32 %v1875_v21 }
0x16ee   :  { %v3061_v20 = vpop.eup %3060 }
0x16ef   :  { %v1877_v31 = vmul.f32 %v3061_v20, %v3255_v16 }
0x16f1   :  { %v1878_v37 = vadd.f32 %v1877_v31, %v3261_v25 }
0x16f3   :  { %1881 = vrot.lane.b32.xlu0 %v1878_v37, %s3146_s17  ;;  %v1879_v28 = vmul.f32 %v1878_v37, %v1666_v58 }
0x1765   :  { %v1882_v38 = vpop.permute.xlu0 %1881 }
0x1766   :  { %v1884_v39 = vmul.f32 %v1882_v38, %v1878_v37 }
0x1768   :  { %1886 = vrot.lane.b32.xlu1 %v1884_v39, %s3147_s18 }
0x17da   :  { %v1887_v33 = vpop.permute.xlu1 %1886 }
0x17db   :  { %v1889_v27 = vadd.f32 %v1887_v33, %v1879_v28  }
0x17dd   :  { %3062 = vtanh.f32 %v1889_v27 }
0x17ea   :  { %v3063_v2 = vpop.eup %3062 }
0x17eb   :  { %1892 = vrot.lane.b32.xlu0 %v3063_v2, %s3146_s17 }
0x185d   :  { %v1893_v3 = vpop.permute.xlu0 %1892 }
0x185e   :  { %v1895_v4 = vmul.f32 %v1893_v3, %v1878_v37  }
0x1860   :  { %v1969_v26 = vsel %vm1968_vm5, %v1895_v4, -inf  ;;  %v1896_v32 = vpack.c.bf16 %v1895_v4, %v1895_v4 }
0x1861   :  { %1970 = vmax.xlane.f32.xlu0 %v1969_v26 }
0x1862   :  { %1909 = vrot.lane.b32.xlu1 %v1896_v32, %s3147_s18 }
0x1866   :  { %1974 = vrot.lane.b32.xlu1 %v3742_v35, %s3148_s26 }
0x18d4   :  { %v1910_v40 = vpop.permute.xlu1 %1909 }
0x18d5   :  { %2884 = vmatmul.mubr.msk.bf16.vlgmr.msra.gmra.mxu0 %vm59_vm1, %v1910_v40 }
0x18d8   :  { %v1975_v41 = vpop.permute.xlu1 %1974 }
0x18ea   :  { %v1971_v42 = vpop.xlane.xlu0 %1970 }
0x18eb   :  { %vm1972_vm6 = vcmp.eq.f32.partialorder %v1895_v4, %v1971_v42 }
0x18ec   :  { %v1977_v43 = vsel %vm1972_vm6, %v1975_v41, 32.0 }
0x18ed   :  { %v1978_v44 = vsel %vm1968_vm5, %v1977_v43, inf }
0x18ee   :  { %1979 = vmin.xlane.f32.xlu1 %v1978_v44 }
0x1977   :  { %v1980_v36 = vpop.xlane.xlu1 %1979 }
0x1978   :  { %vm1981_vm7 = vcmp.eq.f32.partialorder %v3742_v35, %v1980_v36 }
0x1979   :  { %v2483_v45 = vsel %vm1981_vm7, 1.0, %v3142_v0 }
0x197a   :  { %v1984_v46 = vpack.c.bf16 %v2483_v45, %v2483_v45  }
0x1995   :  { %v1960_v49 = vpop.f32.mrf.mxu0 }
0x1996   :  { %v1961_v50 = vadd.f32 %v2479_v8, %v1960_v49 }
0x1997   :  { %v2885_v48 = vpop.f32.mrf.mxu0 }
0x1998   :  { %1967 = vst.msk [vmem:[%s3907_s8] sm:$0x3] %vm1966_vm8, %v1961_v50 }
0x1999   :  { %v1963_v51 = vpop.f32.mrf.mxu0 }
0x199b   :  { %v2886_v52 = vpop.f32.mrf.mxu0 }
0x199c LB: > { %v3149_v0 = vmov 0.0   ;;  %v3074_v47 = vld [vmem:[%s3899_s3 + $0x18] sm:$0xff]   ;;  %v2004_v53 = vpack.c.bf16 %v3136_v10, %v3136_v10  ;;  %vm3150_vm9 = vmmov 0   ;;  %v3075_v54 = vld [vmem:[%s3899_s3 + $0x10] sm:$0xff]   ;;  %s3151_s12 = smov 32   ;;  %v3076_v55 = vld [vmem:[%s3899_s3 + $0x8] sm:$0xff]   ;;  %v2169_v24 = vpack.c.bf16 %v3132_v4, %v3132_v4  ;;  %s3140_s29 = sphi %s3767_s29, %s1990_s29   ;;  %v3136_v10 = vphi %v3718_v10, %v3846_v10   ;;  %v3132_v4 = vphi %v1895_v4, %v2318_v4   ;;  %v3128_v61 = vphi %v3712_v61, %v3824_v61   ;;  %v3124_v27 = vphi %v1889_v27, %v2312_v27   ;;  %v3120_v46 = vphi %v1984_v46, %v2404_v46  }
0x199d   : > { %2895 = vmatprep.subr.bf16.mxu1 %v3149_v0  ;;  %2887 = vmatprep.subr.bf16.mxu0 %v3149_v0  ;;  %v3078_v56 = vld [vmem:[%s3900_s1 + $0x18] sm:$0xff]   ;;  %v3079_v57 = vld [vmem:[%s3900_s1 + $0x10] sm:$0xff]   ;;  %v3077_v58 = vld [vmem:[%s3899_s3] sm:$0xff]   ;;  %vm2091_vm10 = vcmask 523264   ;;  %s3152_s24 = smov 64   ;;  %s2504_s0 = sshll.u32 %s3140_s29, 1 }
0x199e   : > { %2903 = vmatprep.mubr.msk.bf16.mxu1 %vm3150_vm9, %v3149_v0  ;;  %2891 = vmatprep.mubr.msk.bf16.mxu0 %vm3150_vm9, %v3149_v0  ;;  %v2492_v9 = vld [vmem:[%s3902_s4] ss:$0 sm:$0xff]  ;;  %v3080_v21 = vld [vmem:[%s3903_s2 + $0x18] sm:$0xff]   ;;  %v3081_v29 = vld [vmem:[%s3903_s2 + $0x10] sm:$0xff]   ;;  %s2410_s23 = scalar_lea.vmem %s3907_s8, %s2504_s0  ;;  %s1990_s29 = sadd.s32 1, %s3140_s29  }
0x199f   : > { %2896 = vmatpush3.bf16.msra.mxu1 %v3074_v47  ;;  %2010 = vrot.lane.b32.xlu0 %v2004_v53, %s3151_s12  ;;  %v3082_v31 = vld [vmem:[%s3903_s2 + $0x8] sm:$0xff]   ;;  %v3083_v38 = vld [vmem:[%s3903_s2] sm:$0xff]   ;;  %p1987_p0 = scmp.ge.s32.totalorder %s1990_s29, 179  }
0x19a0   : > { %2897 = vmatprep.subr.bf16.mxu1 %v3149_v0  ;;  %2888 = vmatpush3.bf16.msra.mxu0 %v3078_v56  ;;  %v2499_v26 = vld [vmem:[%s3904_s5] ss:$0 sm:$0xff]  ;;  %v3084_v51 = vld [vmem:[%s3905_s6 + $0x8] sm:$0xff]  }
0x19a1   : > { %2889 = vmatprep.subr.bf16.mxu0 %v3149_v0  ;;  %v3085_v52 = vld [vmem:[%s3905_s6] sm:$0xff]  }
0x19a2   : > { %v2500_v56 = vld [vmem:[%s3906_s7] ss:$0 sm:$0xff] }
0x19a3   : > { %2898 = vmatpush3.bf16.msra.mxu1 %v3075_v54 }
0x19a4   : > { %2899 = vmatprep.subr.bf16.mxu1 %v3149_v0  ;;  %2890 = vmatpush3.bf16.msra.mxu0 %v3079_v57 }
0x19a5   : > { %2907 = vmatprep.subr.bf16.mxu0 %v3149_v0 }
0x19a7   : > { %2900 = vmatpush3.bf16.msra.mxu1 %v3076_v55 }
0x19a8   : > { %2901 = vmatprep.subr.bf16.mxu1 %v3149_v0 }
0x19ab   : > { %2902 = vmatpush3.bf16.msra.mxu1 %v3077_v58 }
0x19ac   : > { %2923 = vmatprep.subr.bf16.mxu1 %v3149_v0 }
0x19ae   : > { %2904 = vmatmul.mubr.msk.bf16.vlgmr.msra.gmra.mxu1 %vm2091_vm10, %v3120_v46 }
0x19af   : > { %2927 = vmatprep.mubr.msk.bf16.mxu1 %vm3150_vm9, %v3149_v0  ;;  %2924 = vmatpush3.bf16.msra.mxu1 %v3084_v51 }
0x19b0   : > { %2925 = vmatprep.subr.bf16.mxu1 %v3149_v0 }
0x19b3   : > { %2926 = vmatpush3.bf16.msra.mxu1 %v3085_v52 }
0x1a11   : > { %v2011_v59 = vpop.permute.xlu0 %2010 }
0x1a12   : > { %2892 = vmatmul.mubr.msk.bf16.vlgmr.msra.gmra.mxu0 %vm59_vm1, %v2011_v59 }
0x1a13   : > { %2911 = vmatprep.mubr.msk.bf16.mxu0 %vm3150_vm9, %v3149_v0  ;;  %2908 = vmatpush3.bf16.msra.mxu0 %v3080_v21 }
0x1a14   : > { %2909 = vmatprep.subr.bf16.mxu0 %v3149_v0 }
0x1a17   : > { %2910 = vmatpush3.bf16.msra.mxu0 %v3081_v29 }
0x1a18   : > { %2915 = vmatprep.subr.bf16.mxu0 %v3149_v0 }
0x1a6e   : > { %v2129_v60 = vpop.f32.mrf.mxu1 }
0x1a70   : > { %v2905_v62 = vpop.f32.mrf.mxu1 }
0x1a72   : > { %v2132_v63 = vpop.f32.mrf.mxu1 }
0x1a74   : > { %v2906_v5 = vpop.f32.mrf.mxu1 }
0x1ad2   : > { %v2061_v6 = vpop.f32.mrf.mxu0 }
0x1ad3   : > { %v2130_v12 = vadd.f32 %v2129_v60, %v2061_v6 }
0x1ad4   : > { %v2893_v10 = vpop.f32.mrf.mxu0 }
0x1ad5   : > { %v2142_v7 = vadd.f32 %v2492_v9, %v2130_v12 }
0x1ad6   : > { %v2064_v13 = vpop.f32.mrf.mxu0 }
0x1ad7   : > { %v2143_v11 = vmul.f32 %v2142_v7, %v3255_v16 }
0x1ad8   : > { %v2894_v14 = vpop.f32.mrf.mxu0 }
0x1ad9   : > { %3086 = vtanh.f32 %v2143_v11 }
0x1ae6   : > { %v3087_v17 = vpop.eup %3086 }
0x1ae7   : > { %v2145_v18 = vmul.f32 %v3087_v17, %v3255_v16 }
0x1ae9   : > { %v2146_v23 = vadd.f32 %v2145_v18, %v3261_v25 }
0x1aeb   : > { %2149 = vrot.lane.b32.xlu0 %v2146_v23, %s3152_s24  ;;  %v2147_v30 = vmul.f32 %v3128_v61, %v2146_v23 }
0x1aef   : > { %2175 = vrot.lane.b32.xlu0 %v2169_v24, %s3151_s12 }
0x1b5d   : > { %v2150_v15 = vpop.permute.xlu0 %2149 }
0x1b5e   : > { %v2152_v19 = vmul.f32 %v2150_v15, %v2146_v23 }
0x1b60   : > { %2154 = vrot.lane.b32.xlu1 %v2152_v19, %s3151_s12 }
0x1b61   : > { %v2176_v20 = vpop.permute.xlu0 %2175 }
0x1b62   : > { %2912 = vmatmul.mubr.msk.bf16.vlgmr.msra.gmra.mxu0 %vm59_vm1, %v2176_v20 }
0x1b63   : > { %2916 = vmatpush3.bf16.msra.mxu0 %v3082_v31  ;;  %2919 = vmatprep.mubr.msk.bf16.mxu0 %vm3150_vm9, %v3149_v0 }
0x1b64   : > { %2917 = vmatprep.subr.bf16.mxu0 %v3149_v0 }
0x1b67   : > { %2918 = vmatpush3.bf16.msra.mxu0 %v3083_v38 }
0x1bd2   : > { %v2155_v22 = vpop.permute.xlu1 %2154 }
0x1bd3   : > { %v3824_v61 = vadd.f32 %v2155_v22, %v2147_v30  }
0x1bd5   : > { %3088 = vtanh.f32 %v3824_v61 }
0x1be2   : > { %v3089_v37 = vpop.eup %3088 }
0x1be3   : > { %2160 = vrot.lane.b32.xlu1 %v3089_v37, %s3152_s24 }
0x1c22   : > { %v2226_v33 = vpop.f32.mrf.mxu0 }
0x1c24   : > { %v2913_v34 = vpop.f32.mrf.mxu0 }
0x1c26   : > { %v2229_v1 = vpop.f32.mrf.mxu0 }
0x1c28   : > { %v2914_v2 = vpop.f32.mrf.mxu0 }
0x1c55   : > { %v2161_v39 = vpop.permute.xlu1 %2160 }
0x1c56   : > { %v3846_v10 = vmul.f32 %v2161_v39, %v2146_v23  }
0x1c58   : > { %v2164_v28 = vpack.c.bf16 %v3846_v10, %v3846_v10 }
0x1c5a   : > { %2233 = vrot.lane.b32.xlu1 %v2164_v28, %s3151_s12 }
0x1ccc   : > { %v2234_v3 = vpop.permute.xlu1 %2233 }
0x1ccd   : > { %2920 = vmatmul.mubr.msk.bf16.vlgmr.msra.gmra.mxu0 %vm59_vm1, %v2234_v3 }
0x1d8d   : > { %v2284_v4 = vpop.f32.mrf.mxu0 }
0x1d8e   : > { %v2285_v32 = vadd.f32 %v2284_v4, %v2226_v33 }
0x1d8f   : > { %v2921_v40 = vpop.f32.mrf.mxu0 }
0x1d90   : > { %v2297_v41 = vadd.f32 %v2499_v26, %v2285_v32 }
0x1d91   : > { %v2287_v42 = vpop.f32.mrf.mxu0 }
0x1d92   : > { %v2298_v43 = vmul.f32 %v2297_v41, %v3255_v16 }
0x1d93   : > { %v2922_v44 = vpop.f32.mrf.mxu0 }
0x1d94   : > { %3090 = vtanh.f32 %v2298_v43 }
0x1da1   : > { %v3091_v36 = vpop.eup %3090 }
0x1da2   : > { %v2300_v45 = vmul.f32 %v3091_v36, %v3255_v16 }
0x1da4   : > { %v2301_v46 = vadd.f32 %v2300_v45, %v3261_v25 }
0x1da6   : > { %2304 = vrot.lane.b32.xlu0 %v2301_v46, %s3152_s24  ;;  %v2302_v50 = vmul.f32 %v3124_v27, %v2301_v46 }
0x1e18   : > { %v2305_v8 = vpop.permute.xlu0 %2304 }
0x1e19   : > { %v2307_v49 = vmul.f32 %v2305_v8, %v2301_v46 }
0x1e1b   : > { %2309 = vrot.lane.b32.xlu1 %v2307_v49, %s3151_s12 }
0x1e8d   : > { %v2310_v48 = vpop.permute.xlu1 %2309 }
0x1e8e   : > { %v2312_v27 = vadd.f32 %v2310_v48, %v2302_v50  }
0x1e90   : > { %3092 = vtanh.f32 %v2312_v27 }
0x1e9d   : > { %v3093_v47 = vpop.eup %3092 }
0x1e9e   : > { %2315 = vrot.lane.b32.xlu0 %v3093_v47, %s3152_s24 }
0x1f10   : > { %v2316_v53 = vpop.permute.xlu0 %2315 }
0x1f11   : > { %v2318_v4 = vmul.f32 %v2316_v53, %v2301_v46  }
0x1f13   : > { %v2319_v54 = vpack.c.bf16 %v2318_v4, %v2318_v4 }
0x1f15   : > { %2332 = vrot.lane.b32.xlu1 %v2319_v54, %s3151_s12 }
0x1f87   : > { %v2333_v55 = vpop.permute.xlu1 %2332 }
0x1f88   : > { %2928 = vmatmul.mubr.msk.bf16.vlgmr.msra.gmra.mxu1 %vm59_vm1, %v2333_v55 }
0x2048   : > { %v2383_v57 = vpop.f32.mrf.mxu1 }
0x2049   : > { %v2384_v58 = vadd.f32 %v2500_v56, %v2383_v57 }
0x204a   : > { %v2929_v59 = vpop.f32.mrf.mxu1 }
0x204b   : > { %2505 = vst.msk [vmem:[%s2410_s23 + $0x2] sm:$0x3] %vm1966_vm8, %v2384_v58  ;;  %v2393_v60 = vsel %vm1966_vm8, %v2384_v58, -inf }
0x204c   : > { %2394 = vmax.xlane.f32.xlu0 %v2393_v60  ;;  %v2386_v62 = vpop.f32.mrf.mxu1 }
0x204e   : > { %v2930_v63 = vpop.f32.mrf.mxu1 }
0x20d5   : > { %v2395_v5 = vpop.xlane.xlu0 %2394 }
0x20d6   : > { %vm2396_vm11 = vcmp.eq.f32.partialorder %v2384_v58, %v2395_v5 }
0x20d7   : > { %v2397_v6 = vsel %vm2396_vm11, %v3742_v35, 64.0 }
0x20d8   : > { %v2398_v9 = vsel %vm1966_vm8, %v2397_v6, inf }
0x20d9   : > { %2399 = vmin.xlane.f32.xlu1 %v2398_v9 }
0x2161   :  { %1989 = sbr.rel (!%p1987_p0) target bundleno = 6556 (0x199c), region = 67 }
0x2162   : > { %v2400_v12 = vpop.xlane.xlu1 %2399 }
0x2163   : > { %vm2401_vm12 = vcmp.eq.f32.partialorder %v3742_v35, %v2400_v12 }
0x2164   : > { %v2506_v7 = vsel %vm2401_vm12, 1.0, %v3149_v0 }
0x2165   : > { %v2404_v46 = vpack.c.bf16 %v2506_v7, %v2506_v7  }

</bundles_post_ra>
